<compile_context>
chip_gen: v5e
topology: v5e:2x2
jax: 0.10.0
libtpu: 0.0.40
codegen_flags: <defaults>
</compile_context>

<pallas_src>
import functools

import jax
import jax.numpy as jnp
from jax.experimental import pallas as pl
from jax.experimental.pallas import tpu as pltpu

LN_EPS = 1e-5


def _round_up(v, m):
    return -(-v // m) * m


def _patch_merging_kernel(x_ref, wa_ref, wb_ref, bias_ref, o_ref, *, n_wo, n_feat):
    """Fused 2x2 gather + LayerNorm + Linear for one row-group tile.

    x_ref:    (TR, 2, Wo, 2C)  dim 1 = h-parity
                               (0 -> even rows = [x0|x2], 1 -> odd rows = [x1|x3]).
    wa_ref:   (2C, Mout) bf16  gamma-folded reduction weight rows for parity 0.
    wb_ref:   (2C, Mout) bf16  gamma-folded reduction weight rows for parity 1.
    bias_ref: (1, Mout)  f32   beta @ W^T (LayerNorm beta folded through Linear).
    o_ref:    (TR, Wo, Mout)
    """
    wa = wa_ref[...]                      # keep bf16 for the MXU
    wb = wb_ref[...]
    bias = bias_ref[...]
    inv_k = 1.0 / float(n_feat)

    # Statically unrolled loop over the Wo output columns held in this block.
    for wo in range(n_wo):
        a = x_ref[:, 0, wo, :].astype(jnp.float32)   # (TR, 2C) = [x0 | x2]
        b = x_ref[:, 1, wo, :].astype(jnp.float32)   # (TR, 2C) = [x1 | x3]

        # LayerNorm statistics over the full 4C channels (order invariant), f32.
        mean = (jnp.sum(a, -1, keepdims=True)
                + jnp.sum(b, -1, keepdims=True)) * inv_k
        ac = a - mean
        bc = b - mean
        var = (jnp.sum(ac * ac, -1, keepdims=True)
               + jnp.sum(bc * bc, -1, keepdims=True)) * inv_k
        inv = jax.lax.rsqrt(var + LN_EPS)            # (TR, 1)

        # gamma already folded into wa/wb; beta folded into `bias`; the per-row
        # inverse-stddev scale commutes with the matmul -> applied afterwards.
        y = jnp.dot(ac.astype(wa.dtype), wa, preferred_element_type=jnp.float32)
        y = y + jnp.dot(bc.astype(wb.dtype), wb, preferred_element_type=jnp.float32)
        o_ref[:, wo, :] = (y * inv + bias).astype(o_ref.dtype)


def patch_merging(x, ln_weight, ln_bias, red_weight, *,
                  vmem_budget_bytes=24 * 1024 * 1024):
    """PatchMerging forward.

    Args:
      x:          (B, D, H, W, C) input features.
      ln_weight:  (4C,) LayerNorm gamma.
      ln_bias:    (4C,) LayerNorm beta.
      red_weight: (2C, 4C) Linear weight, PyTorch layout (out_features, in_features).

    Returns:
      (B, D, ceil(H/2), ceil(W/2), 2C)
    """
    B, D, H, W, C = x.shape
    Mout = red_weight.shape[0]
    assert red_weight.shape == (Mout, 4 * C), red_weight.shape

    # Pad H / W to even (matches F.pad(x, (0, 0, 0, W % 2, 0, H % 2))).
    if (H % 2 == 1) or (W % 2 == 1):
        x = jnp.pad(x, ((0, 0), (0, 0), (0, H % 2), (0, W % 2), (0, 0)))
    Hp, Wp = x.shape[2], x.shape[3]
    Ho, Wo = Hp // 2, Wp // 2
    R = B * D * Ho

    # Zero-copy view: (B, D, Ho, 2, Wo, 2, C) -> (R, 2, Wo, 2C).
    # Row r = (b, d, ho); dim 1 = h parity; last dim = [even-w C | odd-w C].
    x_r = x.reshape(R, 2, Wo, 2 * C)

    # Fold gamma into the reduction weight and beta into an output bias, with
    # weight rows permuted into the kernel's channel order:
    #   parity 0 (even h): [x0 | x2] -> original rows [0:C]  ++ [2C:3C]
    #   parity 1 (odd  h): [x1 | x3] -> original rows [C:2C] ++ [3C:4C]
    w_t = red_weight.T.astype(jnp.float32)               # (4C, Mout)
    g = ln_weight.astype(jnp.float32)
    idx_a = jnp.concatenate([jnp.arange(0, C), jnp.arange(2 * C, 3 * C)])
    idx_b = jnp.concatenate([jnp.arange(C, 2 * C), jnp.arange(3 * C, 4 * C)])
    wa = (g[idx_a][:, None] * w_t[idx_a]).astype(jnp.bfloat16)   # (2C, Mout)
    wb = (g[idx_b][:, None] * w_t[idx_b]).astype(jnp.bfloat16)   # (2C, Mout)
    bias = (ln_bias.astype(jnp.float32) @ w_t).reshape(1, Mout)  # (1, Mout) f32

    # Row-group tile size from a VMEM budget: double-buffered in/out blocks
    # (padded to (8,128) tiles) plus f32 temporaries of one loop iteration.
    itm = jnp.dtype(x.dtype).itemsize
    sub_wo = _round_up(Wo, 8)
    lane_in = _round_up(2 * C, 128)
    lane_out = _round_up(Mout, 128)
    row_blocks = 2 * (2 * sub_wo * lane_in + sub_wo * lane_out) * itm
    row_temps = (8 * lane_in + 4 * lane_out) * 4
    tr = (vmem_budget_bytes // (row_blocks + row_temps)) // 8 * 8
    tr = max(8, min(tr, 512, _round_up(R, 8)))
    if R > 8:  # keep >= 2 grid steps so both v7x TensorCores get work
        tr = min(tr, max(8, _round_up(pl.cdiv(R, 2), 8)))
    grid = (pl.cdiv(R, tr),)

    weight_bytes = 2 * (2 * C) * lane_out * 2 + lane_out * 4
    vmem_need = tr * (row_blocks + row_temps) + weight_bytes
    # Explicit limit: at least the 32 MiB default, well under v7x's 64 MiB.
    vmem_limit = int(min(max(vmem_need + (8 << 20), 32 << 20), 56 << 20))

    n_rows = R * Wo
    cost = pl.CostEstimate(
        flops=2 * n_rows * (4 * C) * Mout,
        transcendentals=n_rows,
        bytes_accessed=(x_r.size * itm + n_rows * Mout * itm
                        + (wa.size + wb.size) * 2 + bias.size * 4),
    )

    kernel = functools.partial(_patch_merging_kernel, n_wo=Wo, n_feat=4 * C)
    out = pl.pallas_call(
        kernel,
        out_shape=jax.ShapeDtypeStruct((R, Wo, Mout), x.dtype),
        grid_spec=pltpu.PrefetchScalarGridSpec(
            num_scalar_prefetch=0,
            grid=grid,
            in_specs=[
                pl.BlockSpec((tr, 2, Wo, 2 * C), lambda i: (i, 0, 0, 0)),
                pl.BlockSpec((2 * C, Mout), lambda i: (0, 0)),
                pl.BlockSpec((2 * C, Mout), lambda i: (0, 0)),
                pl.BlockSpec((1, Mout), lambda i: (0, 0)),
            ],
            out_specs=pl.BlockSpec((tr, Wo, Mout), lambda i: (i, 0, 0)),
        ),
        compiler_params=pltpu.CompilerParams(
            dimension_semantics=("parallel",),
            vmem_limit_bytes=vmem_limit,
        ),
        cost_estimate=cost,
    )(x_r, wa, wb, bias)

    return out.reshape(B, D, Ho, Wo, Mout)


def _reference(x, ln_weight, ln_bias, red_weight):
    """Plain-JAX f32 reference of the PyTorch forward, for a sanity check."""
    B, D, H, W, C = x.shape
    if (H % 2 == 1) or (W % 2 == 1):
        x = jnp.pad(x, ((0, 0), (0, 0), (0, H % 2), (0, W % 2), (0, 0)))
    x0 = x[:, :, 0::2, 0::2, :]
    x1 = x[:, :, 1::2, 0::2, :]
    x2 = x[:, :, 0::2, 1::2, :]
    x3 = x[:, :, 1::2, 1::2, :]
    xc = jnp.concatenate([x0, x1, x2, x3], axis=-1).astype(jnp.float32)
    mean = jnp.mean(xc, axis=-1, keepdims=True)
    var = jnp.mean((xc - mean) ** 2, axis=-1, keepdims=True)
    xn = (xc - mean) / jnp.sqrt(var + LN_EPS) * ln_weight + ln_bias
    return jnp.einsum("bdhwk,ok->bdhwo", xn, red_weight.astype(jnp.float32))


if __name__ == "__main__":
    key = jax.random.PRNGKey(0)
    kx, kw, kg, kb = jax.random.split(key, 4)

    # Small shapes: dim C = 32  ->  4C = 128, 2C = 64.
    B, D, H, W, C = 2, 2, 8, 8, 32
    x = jax.random.normal(kx, (B, D, H, W, C), dtype=jnp.float32)

    ln_weight = 1.0 + 0.01 * jax.random.normal(kg, (4 * C,), dtype=jnp.float32)
    ln_bias = 0.01 * jax.random.normal(kb, (4 * C,), dtype=jnp.float32)
    red_weight = (
        jax.random.normal(kw, (2 * C, 4 * C), dtype=jnp.float32)
        / jnp.sqrt(4.0 * C)
    )

    out = jax.block_until_ready(patch_merging(x, ln_weight, ln_bias, red_weight))
    ref = _reference(x, ln_weight, ln_bias, red_weight)
    assert out.shape == (B, D, H // 2, W // 2, 2 * C), out.shape
    # bf16 matmul with f32 accumulation vs the f32 reference.
    assert jnp.allclose(out, ref, atol=3e-2, rtol=3e-2), (
        float(jnp.max(jnp.abs(out - ref)))
    )

    # Odd spatial dims exercise the same zero-padding path as the PyTorch module.
    B2, D2, H2, W2 = 2, 2, 7, 9
    x2 = jax.random.normal(kx, (B2, D2, H2, W2, C), dtype=jnp.float32)
    out2 = jax.block_until_ready(patch_merging(x2, ln_weight, ln_bias, red_weight))
    ref2 = _reference(x2, ln_weight, ln_bias, red_weight)
    assert out2.shape == (B2, D2, (H2 + 1) // 2, (W2 + 1) // 2, 2 * C), out2.shape
    assert jnp.allclose(out2, ref2, atol=3e-2, rtol=3e-2), (
        float(jnp.max(jnp.abs(out2 - ref2)))
    )

    print("KERNEL_OK")
</pallas_src>

<mosaic_0001>
module attributes {stable_mosaic.version = 11 : i64} {
  func.func @_patch_merging_kernel(%arg0: i32, %arg1: memref<8x2x4x64xf32, #tpu.memory_space<vmem>>, %arg2: memref<64x64xbf16, #tpu.memory_space<vmem>>, %arg3: memref<64x64xbf16, #tpu.memory_space<vmem>>, %arg4: memref<1x64xf32, #tpu.memory_space<vmem>>, %arg5: memref<8x4x64xf32, #tpu.memory_space<vmem>>) attributes {dimension_semantics = [#tpu.dimension_semantics<parallel>], iteration_bounds = array<i64: 2>, scalar_prefetch = 0 : i64, scratch_operands = 0 : i64, tpu.core_type = #tpu.core_type<tc>, window_params = [{transform_indices = @transform_0, window_bounds = array<i64: 8, 2, 4, 64>}, {pipeline_mode = #tpu.pipeline_mode<synchronous>, transform_indices = @transform_1, window_bounds = array<i64: 64, 64>}, {pipeline_mode = #tpu.pipeline_mode<synchronous>, transform_indices = @transform_2, window_bounds = array<i64: 64, 64>}, {pipeline_mode = #tpu.pipeline_mode<synchronous>, transform_indices = @transform_3, window_bounds = array<i64: 1, 64>}, {transform_indices = @transform_4, window_bounds = array<i64: 8, 4, 64>}]} {
    %c0 = arith.constant 0 : index
    %c0_0 = arith.constant 0 : index
    %0 = vector.load %arg2[%c0, %c0_0] : memref<64x64xbf16, #tpu.memory_space<vmem>>, vector<64x64xbf16>
    %c0_1 = arith.constant 0 : index
    %c0_2 = arith.constant 0 : index
    %1 = vector.load %arg3[%c0_1, %c0_2] : memref<64x64xbf16, #tpu.memory_space<vmem>>, vector<64x64xbf16>
    %c0_3 = arith.constant 0 : index
    %c0_4 = arith.constant 0 : index
    %2 = vector.load %arg4[%c0_3, %c0_4] : memref<1x64xf32, #tpu.memory_space<vmem>>, vector<1x64xf32>
    %c0_5 = arith.constant 0 : index
    %c0_6 = arith.constant 0 : index
    %c0_7 = arith.constant 0 : index
    %c0_8 = arith.constant 0 : index
    %3 = vector.load %arg1[%c0_5, %c0_6, %c0_7, %c0_8] : memref<8x2x4x64xf32, #tpu.memory_space<vmem>>, vector<8x1x1x64xf32>
    %4 = vector.shape_cast %3 : vector<8x1x1x64xf32> to vector<8x64xf32>
    %c0_9 = arith.constant 0 : index
    %c1 = arith.constant 1 : index
    %c0_10 = arith.constant 0 : index
    %c0_11 = arith.constant 0 : index
    %5 = vector.load %arg1[%c0_9, %c1, %c0_10, %c0_11] : memref<8x2x4x64xf32, #tpu.memory_space<vmem>>, vector<8x1x1x64xf32>
    %6 = vector.shape_cast %5 : vector<8x1x1x64xf32> to vector<8x64xf32>
    %cst = arith.constant dense<0.000000e+00> : vector<8xf32>
    %7 = vector.multi_reduction <add>, %4, %cst [1] : vector<8x64xf32> to vector<8xf32>
    %8 = vector.shape_cast %7 : vector<8xf32> to vector<8x1xf32>
    %cst_12 = arith.constant dense<0.000000e+00> : vector<8xf32>
    %9 = vector.multi_reduction <add>, %6, %cst_12 [1] : vector<8x64xf32> to vector<8xf32>
    %10 = vector.shape_cast %9 : vector<8xf32> to vector<8x1xf32>
    %11 = arith.addf %8, %10 : vector<8x1xf32>
    %cst_13 = arith.constant 7.812500e-03 : f32
    %12 = vector.broadcast %cst_13 : f32 to vector<8x1xf32>
    %13 = arith.mulf %11, %12 : vector<8x1xf32>
    %14 = vector.broadcast %13 : vector<8x1xf32> to vector<8x64xf32>
    %15 = arith.subf %4, %14 : vector<8x64xf32>
    %16 = vector.broadcast %13 : vector<8x1xf32> to vector<8x64xf32>
    %17 = arith.subf %6, %16 : vector<8x64xf32>
    %18 = arith.mulf %15, %15 : vector<8x64xf32>
    %cst_14 = arith.constant dense<0.000000e+00> : vector<8xf32>
    %19 = vector.multi_reduction <add>, %18, %cst_14 [1] : vector<8x64xf32> to vector<8xf32>
    %20 = vector.shape_cast %19 : vector<8xf32> to vector<8x1xf32>
    %21 = arith.mulf %17, %17 : vector<8x64xf32>
    %cst_15 = arith.constant dense<0.000000e+00> : vector<8xf32>
    %22 = vector.multi_reduction <add>, %21, %cst_15 [1] : vector<8x64xf32> to vector<8xf32>
    %23 = vector.shape_cast %22 : vector<8xf32> to vector<8x1xf32>
    %24 = arith.addf %20, %23 : vector<8x1xf32>
    %cst_16 = arith.constant 7.812500e-03 : f32
    %25 = vector.broadcast %cst_16 : f32 to vector<8x1xf32>
    %26 = arith.mulf %24, %25 : vector<8x1xf32>
    %cst_17 = arith.constant 9.99999974E-6 : f32
    %27 = vector.broadcast %cst_17 : f32 to vector<8x1xf32>
    %28 = arith.addf %26, %27 : vector<8x1xf32>
    %29 = math.rsqrt %28 : vector<8x1xf32>
    %30 = arith.truncf %15 : vector<8x64xf32> to vector<8x64xbf16>
    %cst_18 = arith.constant dense<0.000000e+00> : vector<8x64xf32>
    %31 = tpu.matmul %30, %0, %cst_18 {dimension_numbers = #tpu.dot_dimension_numbers<[1], [0], [0], [1], [0, 0, 1, 1], [], []>} : vector<8x64xbf16>, vector<64x64xbf16>, vector<8x64xf32> -> vector<8x64xf32>
    %32 = arith.truncf %17 : vector<8x64xf32> to vector<8x64xbf16>
    %cst_19 = arith.constant dense<0.000000e+00> : vector<8x64xf32>
    %33 = tpu.matmul %32, %1, %cst_19 {dimension_numbers = #tpu.dot_dimension_numbers<[1], [0], [0], [1], [0, 0, 1, 1], [], []>} : vector<8x64xbf16>, vector<64x64xbf16>, vector<8x64xf32> -> vector<8x64xf32>
    %34 = arith.addf %31, %33 : vector<8x64xf32>
    %35 = vector.broadcast %29 : vector<8x1xf32> to vector<8x64xf32>
    %36 = arith.mulf %34, %35 : vector<8x64xf32>
    %37 = vector.broadcast %2 : vector<1x64xf32> to vector<8x64xf32>
    %38 = arith.addf %36, %37 : vector<8x64xf32>
    %c0_20 = arith.constant 0 : index
    %c0_21 = arith.constant 0 : index
    %c0_22 = arith.constant 0 : index
    %39 = vector.load %arg5[%c0_20, %c0_21, %c0_22] : memref<8x4x64xf32, #tpu.memory_space<vmem>>, vector<8x1x64xf32>
    %40 = vector.shape_cast %39 : vector<8x1x64xf32> to vector<8x64xf32>
    %41 = vector.shape_cast %38 : vector<8x64xf32> to vector<8x1x64xf32>
    tpu.vector_store %arg5[%c0_20, %c0_21, %c0_22], %41 {strides = array<i32>} : memref<8x4x64xf32, #tpu.memory_space<vmem>>, vector<8x1x64xf32>,
    %c0_23 = arith.constant 0 : index
    %c0_24 = arith.constant 0 : index
    %c1_25 = arith.constant 1 : index
    %c0_26 = arith.constant 0 : index
    %42 = vector.load %arg1[%c0_23, %c0_24, %c1_25, %c0_26] : memref<8x2x4x64xf32, #tpu.memory_space<vmem>>, vector<8x1x1x64xf32>
    %43 = vector.shape_cast %42 : vector<8x1x1x64xf32> to vector<8x64xf32>
    %c0_27 = arith.constant 0 : index
    %c1_28 = arith.constant 1 : index
    %c1_29 = arith.constant 1 : index
    %c0_30 = arith.constant 0 : index
    %44 = vector.load %arg1[%c0_27, %c1_28, %c1_29, %c0_30] : memref<8x2x4x64xf32, #tpu.memory_space<vmem>>, vector<8x1x1x64xf32>
    %45 = vector.shape_cast %44 : vector<8x1x1x64xf32> to vector<8x64xf32>
    %cst_31 = arith.constant dense<0.000000e+00> : vector<8xf32>
    %46 = vector.multi_reduction <add>, %43, %cst_31 [1] : vector<8x64xf32> to vector<8xf32>
    %47 = vector.shape_cast %46 : vector<8xf32> to vector<8x1xf32>
    %cst_32 = arith.constant dense<0.000000e+00> : vector<8xf32>
    %48 = vector.multi_reduction <add>, %45, %cst_32 [1] : vector<8x64xf32> to vector<8xf32>
    %49 = vector.shape_cast %48 : vector<8xf32> to vector<8x1xf32>
    %50 = arith.addf %47, %49 : vector<8x1xf32>
    %cst_33 = arith.constant 7.812500e-03 : f32
    %51 = vector.broadcast %cst_33 : f32 to vector<8x1xf32>
    %52 = arith.mulf %50, %51 : vector<8x1xf32>
    %53 = vector.broadcast %52 : vector<8x1xf32> to vector<8x64xf32>
    %54 = arith.subf %43, %53 : vector<8x64xf32>
    %55 = vector.broadcast %52 : vector<8x1xf32> to vector<8x64xf32>
    %56 = arith.subf %45, %55 : vector<8x64xf32>
    %57 = arith.mulf %54, %54 : vector<8x64xf32>
    %cst_34 = arith.constant dense<0.000000e+00> : vector<8xf32>
    %58 = vector.multi_reduction <add>, %57, %cst_34 [1] : vector<8x64xf32> to vector<8xf32>
    %59 = vector.shape_cast %58 : vector<8xf32> to vector<8x1xf32>
    %60 = arith.mulf %56, %56 : vector<8x64xf32>
    %cst_35 = arith.constant dense<0.000000e+00> : vector<8xf32>
    %61 = vector.multi_reduction <add>, %60, %cst_35 [1] : vector<8x64xf32> to vector<8xf32>
    %62 = vector.shape_cast %61 : vector<8xf32> to vector<8x1xf32>
    %63 = arith.addf %59, %62 : vector<8x1xf32>
    %cst_36 = arith.constant 7.812500e-03 : f32
    %64 = vector.broadcast %cst_36 : f32 to vector<8x1xf32>
    %65 = arith.mulf %63, %64 : vector<8x1xf32>
    %cst_37 = arith.constant 9.99999974E-6 : f32
    %66 = vector.broadcast %cst_37 : f32 to vector<8x1xf32>
    %67 = arith.addf %65, %66 : vector<8x1xf32>
    %68 = math.rsqrt %67 : vector<8x1xf32>
    %69 = arith.truncf %54 : vector<8x64xf32> to vector<8x64xbf16>
    %cst_38 = arith.constant dense<0.000000e+00> : vector<8x64xf32>
    %70 = tpu.matmul %69, %0, %cst_38 {dimension_numbers = #tpu.dot_dimension_numbers<[1], [0], [0], [1], [0, 0, 1, 1], [], []>} : vector<8x64xbf16>, vector<64x64xbf16>, vector<8x64xf32> -> vector<8x64xf32>
    %71 = arith.truncf %56 : vector<8x64xf32> to vector<8x64xbf16>
    %cst_39 = arith.constant dense<0.000000e+00> : vector<8x64xf32>
    %72 = tpu.matmul %71, %1, %cst_39 {dimension_numbers = #tpu.dot_dimension_numbers<[1], [0], [0], [1], [0, 0, 1, 1], [], []>} : vector<8x64xbf16>, vector<64x64xbf16>, vector<8x64xf32> -> vector<8x64xf32>
    %73 = arith.addf %70, %72 : vector<8x64xf32>
    %74 = vector.broadcast %68 : vector<8x1xf32> to vector<8x64xf32>
    %75 = arith.mulf %73, %74 : vector<8x64xf32>
    %76 = vector.broadcast %2 : vector<1x64xf32> to vector<8x64xf32>
    %77 = arith.addf %75, %76 : vector<8x64xf32>
    %c0_40 = arith.constant 0 : index
    %c1_41 = arith.constant 1 : index
    %c0_42 = arith.constant 0 : index
    %78 = vector.load %arg5[%c0_40, %c1_41, %c0_42] : memref<8x4x64xf32, #tpu.memory_space<vmem>>, vector<8x1x64xf32>
    %79 = vector.shape_cast %78 : vector<8x1x64xf32> to vector<8x64xf32>
    %80 = vector.shape_cast %77 : vector<8x64xf32> to vector<8x1x64xf32>
    tpu.vector_store %arg5[%c0_40, %c1_41, %c0_42], %80 {strides = array<i32>} : memref<8x4x64xf32, #tpu.memory_space<vmem>>, vector<8x1x64xf32>,
    %c0_43 = arith.constant 0 : index
    %c0_44 = arith.constant 0 : index
    %c2 = arith.constant 2 : index
    %c0_45 = arith.constant 0 : index
    %81 = vector.load %arg1[%c0_43, %c0_44, %c2, %c0_45] : memref<8x2x4x64xf32, #tpu.memory_space<vmem>>, vector<8x1x1x64xf32>
    %82 = vector.shape_cast %81 : vector<8x1x1x64xf32> to vector<8x64xf32>
    %c0_46 = arith.constant 0 : index
    %c1_47 = arith.constant 1 : index
    %c2_48 = arith.constant 2 : index
    %c0_49 = arith.constant 0 : index
    %83 = vector.load %arg1[%c0_46, %c1_47, %c2_48, %c0_49] : memref<8x2x4x64xf32, #tpu.memory_space<vmem>>, vector<8x1x1x64xf32>
    %84 = vector.shape_cast %83 : vector<8x1x1x64xf32> to vector<8x64xf32>
    %cst_50 = arith.constant dense<0.000000e+00> : vector<8xf32>
    %85 = vector.multi_reduction <add>, %82, %cst_50 [1] : vector<8x64xf32> to vector<8xf32>
    %86 = vector.shape_cast %85 : vector<8xf32> to vector<8x1xf32>
    %cst_51 = arith.constant dense<0.000000e+00> : vector<8xf32>
    %87 = vector.multi_reduction <add>, %84, %cst_51 [1] : vector<8x64xf32> to vector<8xf32>
    %88 = vector.shape_cast %87 : vector<8xf32> to vector<8x1xf32>
    %89 = arith.addf %86, %88 : vector<8x1xf32>
    %cst_52 = arith.constant 7.812500e-03 : f32
    %90 = vector.broadcast %cst_52 : f32 to vector<8x1xf32>
    %91 = arith.mulf %89, %90 : vector<8x1xf32>
    %92 = vector.broadcast %91 : vector<8x1xf32> to vector<8x64xf32>
    %93 = arith.subf %82, %92 : vector<8x64xf32>
    %94 = vector.broadcast %91 : vector<8x1xf32> to vector<8x64xf32>
    %95 = arith.subf %84, %94 : vector<8x64xf32>
    %96 = arith.mulf %93, %93 : vector<8x64xf32>
    %cst_53 = arith.constant dense<0.000000e+00> : vector<8xf32>
    %97 = vector.multi_reduction <add>, %96, %cst_53 [1] : vector<8x64xf32> to vector<8xf32>
    %98 = vector.shape_cast %97 : vector<8xf32> to vector<8x1xf32>
    %99 = arith.mulf %95, %95 : vector<8x64xf32>
    %cst_54 = arith.constant dense<0.000000e+00> : vector<8xf32>
    %100 = vector.multi_reduction <add>, %99, %cst_54 [1] : vector<8x64xf32> to vector<8xf32>
    %101 = vector.shape_cast %100 : vector<8xf32> to vector<8x1xf32>
    %102 = arith.addf %98, %101 : vector<8x1xf32>
    %cst_55 = arith.constant 7.812500e-03 : f32
    %103 = vector.broadcast %cst_55 : f32 to vector<8x1xf32>
    %104 = arith.mulf %102, %103 : vector<8x1xf32>
    %cst_56 = arith.constant 9.99999974E-6 : f32
    %105 = vector.broadcast %cst_56 : f32 to vector<8x1xf32>
    %106 = arith.addf %104, %105 : vector<8x1xf32>
    %107 = math.rsqrt %106 : vector<8x1xf32>
    %108 = arith.truncf %93 : vector<8x64xf32> to vector<8x64xbf16>
    %cst_57 = arith.constant dense<0.000000e+00> : vector<8x64xf32>
    %109 = tpu.matmul %108, %0, %cst_57 {dimension_numbers = #tpu.dot_dimension_numbers<[1], [0], [0], [1], [0, 0, 1, 1], [], []>} : vector<8x64xbf16>, vector<64x64xbf16>, vector<8x64xf32> -> vector<8x64xf32>
    %110 = arith.truncf %95 : vector<8x64xf32> to vector<8x64xbf16>
    %cst_58 = arith.constant dense<0.000000e+00> : vector<8x64xf32>
    %111 = tpu.matmul %110, %1, %cst_58 {dimension_numbers = #tpu.dot_dimension_numbers<[1], [0], [0], [1], [0, 0, 1, 1], [], []>} : vector<8x64xbf16>, vector<64x64xbf16>, vector<8x64xf32> -> vector<8x64xf32>
    %112 = arith.addf %109, %111 : vector<8x64xf32>
    %113 = vector.broadcast %107 : vector<8x1xf32> to vector<8x64xf32>
    %114 = arith.mulf %112, %113 : vector<8x64xf32>
    %115 = vector.broadcast %2 : vector<1x64xf32> to vector<8x64xf32>
    %116 = arith.addf %114, %115 : vector<8x64xf32>
    %c0_59 = arith.constant 0 : index
    %c2_60 = arith.constant 2 : index
    %c0_61 = arith.constant 0 : index
    %117 = vector.load %arg5[%c0_59, %c2_60, %c0_61] : memref<8x4x64xf32, #tpu.memory_space<vmem>>, vector<8x1x64xf32>
    %118 = vector.shape_cast %117 : vector<8x1x64xf32> to vector<8x64xf32>
    %119 = vector.shape_cast %116 : vector<8x64xf32> to vector<8x1x64xf32>
    tpu.vector_store %arg5[%c0_59, %c2_60, %c0_61], %119 {strides = array<i32>} : memref<8x4x64xf32, #tpu.memory_space<vmem>>, vector<8x1x64xf32>,
    %c0_62 = arith.constant 0 : index
    %c0_63 = arith.constant 0 : index
    %c3 = arith.constant 3 : index
    %c0_64 = arith.constant 0 : index
    %120 = vector.load %arg1[%c0_62, %c0_63, %c3, %c0_64] : memref<8x2x4x64xf32, #tpu.memory_space<vmem>>, vector<8x1x1x64xf32>
    %121 = vector.shape_cast %120 : vector<8x1x1x64xf32> to vector<8x64xf32>
    %c0_65 = arith.constant 0 : index
    %c1_66 = arith.constant 1 : index
    %c3_67 = arith.constant 3 : index
    %c0_68 = arith.constant 0 : index
    %122 = vector.load %arg1[%c0_65, %c1_66, %c3_67, %c0_68] : memref<8x2x4x64xf32, #tpu.memory_space<vmem>>, vector<8x1x1x64xf32>
    %123 = vector.shape_cast %122 : vector<8x1x1x64xf32> to vector<8x64xf32>
    %cst_69 = arith.constant dense<0.000000e+00> : vector<8xf32>
    %124 = vector.multi_reduction <add>, %121, %cst_69 [1] : vector<8x64xf32> to vector<8xf32>
    %125 = vector.shape_cast %124 : vector<8xf32> to vector<8x1xf32>
    %cst_70 = arith.constant dense<0.000000e+00> : vector<8xf32>
    %126 = vector.multi_reduction <add>, %123, %cst_70 [1] : vector<8x64xf32> to vector<8xf32>
    %127 = vector.shape_cast %126 : vector<8xf32> to vector<8x1xf32>
    %128 = arith.addf %125, %127 : vector<8x1xf32>
    %cst_71 = arith.constant 7.812500e-03 : f32
    %129 = vector.broadcast %cst_71 : f32 to vector<8x1xf32>
    %130 = arith.mulf %128, %129 : vector<8x1xf32>
    %131 = vector.broadcast %130 : vector<8x1xf32> to vector<8x64xf32>
    %132 = arith.subf %121, %131 : vector<8x64xf32>
    %133 = vector.broadcast %130 : vector<8x1xf32> to vector<8x64xf32>
    %134 = arith.subf %123, %133 : vector<8x64xf32>
    %135 = arith.mulf %132, %132 : vector<8x64xf32>
    %cst_72 = arith.constant dense<0.000000e+00> : vector<8xf32>
    %136 = vector.multi_reduction <add>, %135, %cst_72 [1] : vector<8x64xf32> to vector<8xf32>
    %137 = vector.shape_cast %136 : vector<8xf32> to vector<8x1xf32>
    %138 = arith.mulf %134, %134 : vector<8x64xf32>
    %cst_73 = arith.constant dense<0.000000e+00> : vector<8xf32>
    %139 = vector.multi_reduction <add>, %138, %cst_73 [1] : vector<8x64xf32> to vector<8xf32>
    %140 = vector.shape_cast %139 : vector<8xf32> to vector<8x1xf32>
    %141 = arith.addf %137, %140 : vector<8x1xf32>
    %cst_74 = arith.constant 7.812500e-03 : f32
    %142 = vector.broadcast %cst_74 : f32 to vector<8x1xf32>
    %143 = arith.mulf %141, %142 : vector<8x1xf32>
    %cst_75 = arith.constant 9.99999974E-6 : f32
    %144 = vector.broadcast %cst_75 : f32 to vector<8x1xf32>
    %145 = arith.addf %143, %144 : vector<8x1xf32>
    %146 = math.rsqrt %145 : vector<8x1xf32>
    %147 = arith.truncf %132 : vector<8x64xf32> to vector<8x64xbf16>
    %cst_76 = arith.constant dense<0.000000e+00> : vector<8x64xf32>
    %148 = tpu.matmul %147, %0, %cst_76 {dimension_numbers = #tpu.dot_dimension_numbers<[1], [0], [0], [1], [0, 0, 1, 1], [], []>} : vector<8x64xbf16>, vector<64x64xbf16>, vector<8x64xf32> -> vector<8x64xf32>
    %149 = arith.truncf %134 : vector<8x64xf32> to vector<8x64xbf16>
    %cst_77 = arith.constant dense<0.000000e+00> : vector<8x64xf32>
    %150 = tpu.matmul %149, %1, %cst_77 {dimension_numbers = #tpu.dot_dimension_numbers<[1], [0], [0], [1], [0, 0, 1, 1], [], []>} : vector<8x64xbf16>, vector<64x64xbf16>, vector<8x64xf32> -> vector<8x64xf32>
    %151 = arith.addf %148, %150 : vector<8x64xf32>
    %152 = vector.broadcast %146 : vector<8x1xf32> to vector<8x64xf32>
    %153 = arith.mulf %151, %152 : vector<8x64xf32>
    %154 = vector.broadcast %2 : vector<1x64xf32> to vector<8x64xf32>
    %155 = arith.addf %153, %154 : vector<8x64xf32>
    %c0_78 = arith.constant 0 : index
    %c3_79 = arith.constant 3 : index
    %c0_80 = arith.constant 0 : index
    %156 = vector.load %arg5[%c0_78, %c3_79, %c0_80] : memref<8x4x64xf32, #tpu.memory_space<vmem>>, vector<8x1x64xf32>
    %157 = vector.shape_cast %156 : vector<8x1x64xf32> to vector<8x64xf32>
    %158 = vector.shape_cast %155 : vector<8x64xf32> to vector<8x1x64xf32>
    tpu.vector_store %arg5[%c0_78, %c3_79, %c0_80], %158 {strides = array<i32>} : memref<8x4x64xf32, #tpu.memory_space<vmem>>, vector<8x1x64xf32>,
    return
  }
  func.func @transform_0(%arg0: i32) -> (i32, i32, i32, i32) {
    %c0_i32 = arith.constant 0 : i32
    %c0_i32_0 = arith.constant 0 : i32
    %c0_i32_1 = arith.constant 0 : i32
    %c0_i32_2 = arith.constant 0 : i32
    return %arg0, %c0_i32, %c0_i32_0, %c0_i32_1 : i32, i32, i32, i32
  }
  func.func @transform_1(%arg0: i32) -> (i32, i32) {
    %c0_i32 = arith.constant 0 : i32
    %c0_i32_0 = arith.constant 0 : i32
    %c0_i32_1 = arith.constant 0 : i32
    return %c0_i32, %c0_i32_0 : i32, i32
  }
  func.func @transform_2(%arg0: i32) -> (i32, i32) {
    %c0_i32 = arith.constant 0 : i32
    %c0_i32_0 = arith.constant 0 : i32
    %c0_i32_1 = arith.constant 0 : i32
    return %c0_i32, %c0_i32_0 : i32, i32
  }
  func.func @transform_3(%arg0: i32) -> (i32, i32) {
    %c0_i32 = arith.constant 0 : i32
    %c0_i32_0 = arith.constant 0 : i32
    %c0_i32_1 = arith.constant 0 : i32
    return %c0_i32, %c0_i32_0 : i32, i32
  }
  func.func @transform_4(%arg0: i32) -> (i32, i32, i32) {
    %c0_i32 = arith.constant 0 : i32
    %c0_i32_0 = arith.constant 0 : i32
    %c0_i32_1 = arith.constant 0 : i32
    return %arg0, %c0_i32, %c0_i32_0 : i32, i32, i32
  }
}

</mosaic_0001>

<bundles_post_ra>
// kernel: tpu_custom_call.1
= control target key start
LH: loop header
LB: loop body
LE: loop exit
PB: predicated region body
PF: predicated region fallthrough
CT: control target
= control target key end

     0   :  { %9 = vsyncpa [#allocation3], 0  ;;  %s3285_s0 = inlined_call_operand.hbm [shape: f32[16,2,4,64], index: 0, kind: input, shape index: {}]   ;;  %s3286_s1 = inlined_call_operand.hbm [shape: bf16[64,64], index: 1, kind: input, shape index: {}]   ;;  %s3287_s2 = inlined_call_operand.hbm [shape: bf16[64,64], index: 2, kind: input, shape index: {}]   ;;  %s3288_s3 = inlined_call_operand.vmem [shape: f32[1,64], index: 3, kind: input, shape index: {}]   ;;  %s3289_s4 = inlined_call_operand.hbm [shape: f32[16,4,64], index: 4, kind: output, shape index: {}]  }
   0x1   :  { %11 = vsyncpa [#allocation3 + $0x1], 0 }
   0x2   :  { %12 = vsyncpa [#allocation6], 0 }
   0x3   :  { %13 = vsyncpa [#allocation4], 0 }
   0x4   :  { %15 = vsyncpa [#allocation4 + $0x1], 0  ;;  %s2104_s15 = smov 0   ;;  %s2106_s16 = smov 0  }
   0x5   :  { %s2108_s17 = smov 0   ;;  %s2110_s18 = smov 0  }
   0x6 LB: > { %s2125_s19 = sadd.s32 4294967295, %s2071_s18   ;;  %s1713_s20 = sadd.s32 4294967294, %s2071_s18   ;;  %s2071_s18 = sphi %s2110_s18, %s3380_s18   ;;  %s2067_s17 = sphi %s2108_s17, %s3379_s17   ;;  %s2063_s16 = sphi %s2106_s16, %s3378_s16   ;;  %s2059_s15 = sphi %s2104_s15, %s3377_s15  }
   0x7   : > { %p41_p0 = scmp.ne.s32.totalorder %s2063_s16, %s2059_s15  ;;  %p42_p1 = scmp.eq.s32.totalorder %s2125_s19, 0 }
   0x8   : > { %p128_p2 = scmp.eq.s32.totalorder %s2125_s19, 1  ;;  %p134_p3 = scmp.eq.s32.totalorder %s1713_s20, 1 }
   0x9   : > { %p2134_p4 = por %p42_p1, %p41_p0  ;;  %p1714_p5 = scmp.ge.s32.totalorder %s2071_s18, 1 }
   0xa   : > { %p2139_p6 = por %p134_p3, %p41_p0  ;;  %p141_p7 = scmp.lt.s32.totalorder %s2071_s18, 3 }
   0xb   : > { %s152_s25 = sshll.u32 %s3286_s1, 4  ;;  %s2073_s27 = smov [#allocation5]   ;;  %s153_s25 = int_to_ptr.hbm [resolvable:$true] %s152_s25 }
   0xc   : > { %p2147_p8 = pnand %p1714_p5, %p141_p7  ;;  %s154_s28 = sshll.u32 %s2073_s27, 4  ;;  %s155_s28 = int_to_ptr.vmem [resolvable:$true] %s154_s28 }
   0xd   : > { %s166_s5 = sshll.u32 %s3287_s2, 4  ;;  %s2074_s6 = smov 64   ;;  %s167_s5 = int_to_ptr.hbm [resolvable:$true] %s166_s5 }
   0xe   : > { %p1827_p9 = pneg %p2147_p8  ;;  %s2075_s7 = smov 4  }
   0xf   : > { %s2076_s8 = smov [#allocation7]   ;;  %s2166_s10 = sadd.s32 1, %s2071_s18  }
  0x10   : > { %p1828_p10 = pnand %p1827_p9, %p42_p1  ;;  %s168_s9 = sshll.u32 %s2076_s8, 4  ;;  %s169_s9 = int_to_ptr.vmem [resolvable:$true] %s168_s9 }
  0x11   : > { %s28_s11 = sadd.s32 1, %s2067_s17  ;;  %s25_s12 = ssub.s32 %s2071_s18, %s2166_s10 }
  0x12   : > { %1830 = dma.hbm_to_vmem [thread:$0]  (!%p1828_p10), %s153_s25, 512, %s155_s28, [#allocation6], %s2074_s6, %s2074_s6, %s2075_s7  }
  0x13   : > { %1833 = dma.hbm_to_vmem [thread:$0]  (!%p1828_p10), %s167_s5, 512, %s169_s9, [#allocation6], %s2074_s6, %s2074_s6, %s2075_s7  }
  0x14   : > { %p35_p12 = scmp.ne.s32.totalorder %s2067_s17, %s2063_s16  ;;  %p26_p13 = scmp.eq.s32.totalorder %s25_s12, 0 }
  0x15   : > { %p36_p0 = scmp.eq.s32.totalorder %s2071_s18, 0  ;;  %p1844_p5 = scmp.lt.s32.totalorder %s2071_s18, 2 }
  0x16   : > { %p2176_p3 = por %p128_p2, %p35_p12  ;;  %s185_s20 = sand.u32 1, %s2067_s17  }
  0x17   : > { %s2182_s14 = scalar_select %p26_p13, %s2067_s17, %s28_s11  }
  0x18   : > { %p37_p7 = por %p36_p0, %p35_p12  ;;  %s1718_s23 = sshll.u32 %s185_s20, 6 }
  0x19   : > { %s1805_s24 = sshll.u32 %s2071_s18, 6  ;;  %s189_s29 = scalar_lea.vmem [#allocation2], %s1718_s23 }
  0x1a   : > { %s195_s28 = scalar_lea.hbm %s3285_s0, %s1805_s24  ;;  %s198_s30 = sshll.u32 %s189_s29, 4  ;;  %s199_s30 = int_to_ptr.vmem [resolvable:$true] %s198_s30 }
  0x1b   : > { %s196_s5 = sshll.u32 %s195_s28, 4  ;;  %p2189_p2 = pnand %p1844_p5, %p37_p7  ;;  %s197_s5 = int_to_ptr.hbm [resolvable:$true] %s196_s5 }
  0x1c   : > { %s186_s9 = scalar_lea.sflag [#allocation3], %s185_s20  ;;  %s1971_s11 = sshra.s32 %s197_s5, 4  ;;  %s1972_s11 = int_to_ptr.hbm [resolvable:$true] %s1971_s11 }
  0x1d   : > { %s1973_s12 = scalar_lea.hbm %s1972_s11, 64  ;;  %p1975_p10 = pneg %p2189_p2 }
  0x1e   : > { %p1974_p9 = scmp.ne.s32.totalorder %s1972_s11, %s1973_s12  ;;  %s1978_s25 = scalar_lea.hbm %s3285_s0, 128 }
  0x1f   : > { %p1979_p0 = scmp.lt.s32.totalorder %s1972_s11, %s3285_s0  ;;  %p1980_p5 = scmp.lt.s32.totalorder %s1978_s25, %s1973_s12 }
  0x20   : > { %p1976_p12 = pnand %p1975_p10, %p1974_p9 }
  0x21   : > { %p1981_p7 = por %p1980_p5, %p1979_p0 }
  0x22   : > { %p1977_p13 = pneg %p1976_p12 }
  0x24   : > { %p1982_p11 = pnand %p1981_p7, %p1977_p13 }
  0x26   : > { %1985 = shalt.err (!%p1982_p11)
}
  0x27   : > { %1837 = dma.hbm_to_vmem [thread:$0]  (!%p2189_p2), %s197_s5, 1024, %s199_s30, %s186_s9, %s2074_s6, %s2074_s6, %s2075_s7  }
  0x28   : > { %210 = sbr.rel (%p2147_p8) target bundleno = 484 (0x1e4), region = 36 }
  0x2d   : > { %s2209_s20 = sand.u32 1, %s2063_s16  }
  0x2e   : > { %s1723_s29 = sshll.u32 %s2209_s20, 6  ;;  %s213_s11 = scalar_lea.sflag [#allocation3], %s2209_s20 }
  0x2f   : > { %s2213_s12 = scalar_lea.vmem [#allocation2], %s1723_s29 }
  0x30   : > { %2046 = dma.done.wait (%p2134_p4), %s213_s11, 1024  }
  0x31   : > { %2048 = vsyncadd (%p2134_p4), %s213_s11, 4294966272 }
  0x32   : > { %2050 = dma.done.wait (%p42_p1), [#allocation6], 1024  }
  0x33   : > { %2052 = vsyncadd (%p42_p1), [#allocation6], 4294966272  ;;  %vm298_vm0 = vcmask 1041409   ;;  %vm301_vm1 = vcmask 1042434   ;;  %vm304_vm2 = vcmask 1043459   ;;  %vm307_vm3 = vcmask 1044484  }
  0x34   : > { %vm310_vm4 = vcmask 1045509   ;;  %vm313_vm5 = vcmask 1046534   ;;  %vm316_vm6 = vcmask 1047559   ;;  %v2224_v0 = vld [vmem:[%s2213_s12 + $0x1] sm:$0x1]  ;;  %vm319_vm7 = vcmask 523264  }
  0x35   : > { %v2227_v1 = vld [vmem:[%s2213_s12 + $0x9] sm:$0x1]  ;;  %v2230_v2 = vld [vmem:[%s2213_s12 + $0x11] sm:$0x1]  ;;  %v2233_v3 = vld [vmem:[%s2213_s12 + $0x19] sm:$0x1] }
  0x36   : > { %v2236_v4 = vld [vmem:[%s2213_s12 + $0x21] sm:$0x1]  ;;  %v2239_v5 = vld [vmem:[%s2213_s12 + $0x29] sm:$0x1]  ;;  %v2242_v6 = vld [vmem:[%s2213_s12 + $0x31] sm:$0x1] }
  0x37   : > { %v2245_v7 = vld [vmem:[%s2213_s12 + $0x39] sm:$0x1]  ;;  %v675_v8 = vrot.slane %v2227_v1, 7  ;;  %v677_v9 = vrot.slane %v2230_v2, 6  ;;  %v679_v10 = vrot.slane %v2233_v3, 5  ;;  %v681_v11 = vrot.slane %v2236_v4, 4 }
  0x38   : > { %v683_v12 = vrot.slane %v2239_v5, 3  ;;  %v2253_v13 = vld [vmem:[%s2213_s12] sm:$0x1]  ;;  %v685_v15 = vrot.slane %v2242_v6, 2  ;;  %v687_v16 = vrot.slane %v2245_v7, 1  ;;  %s1726_s21 = sshll.u32 %s2209_s20, 5 }
  0x39   : > { %v676_v14 = vsel %vm298_vm0, %v675_v8, %v2224_v0  ;;  %v2260_v17 = vld [vmem:[%s2213_s12 + $0x8] sm:$0x1]  ;;  %v2263_v18 = vld [vmem:[%s2213_s12 + $0x10] sm:$0x1]  ;;  %v2267_v20 = vld [vmem:[%s2213_s12 + $0x18] sm:$0x1] }
  0x3a   : > { %v678_v19 = vsel %vm301_vm1, %v677_v9, %v676_v14  ;;  %v2270_v21 = vld [vmem:[%s2213_s12 + $0x20] sm:$0x1]  ;;  %v2273_v22 = vld [vmem:[%s2213_s12 + $0x28] sm:$0x1]  ;;  %v2277_v24 = vld [vmem:[%s2213_s12 + $0x30] sm:$0x1] }
  0x3b   : > { %v680_v23 = vsel %vm304_vm2, %v679_v10, %v678_v19  ;;  %v2280_v25 = vld [vmem:[%s2213_s12 + $0x38] sm:$0x1]  ;;  %v297_v26 = vrot.slane %v2260_v17, 7  ;;  %v300_v27 = vrot.slane %v2263_v18, 6  ;;  %v303_v29 = vrot.slane %v2267_v20, 5  ;;  %s3176_s7 = scalar_lea.vmem [#allocation8], %s1726_s21 }
  0x3c   : > { %v682_v28 = vsel %vm307_vm3, %v681_v11, %v680_v23  ;;  %v306_v30 = vrot.slane %v2270_v21, 4  ;;  %v309_v31 = vrot.slane %v2273_v22, 3  ;;  %v1287_v32 = vld [vmem:[%s2213_s12 + $0x3] sm:$0x1]  ;;  %v312_v35 = vrot.slane %v2277_v24, 2  ;;  %s1814_s30 = sshll.u32 %s2125_s19, 5 }
  0x3d   : > { %v684_v33 = vsel %vm310_vm4, %v683_v12, %v682_v28  ;;  %v299_v34 = vsel %vm298_vm0, %v297_v26, %v2253_v13  ;;  %v315_v36 = vrot.slane %v2280_v25, 1  ;;  %v1288_v37 = vld [vmem:[%s2213_s12 + $0xb] sm:$0x1]  ;;  %v1289_v38 = vld [vmem:[%s2213_s12 + $0x13] sm:$0x1]  ;;  %vm642_vm11 = vcmask 516096   ;;  %s1617_s9 = scalar_lea.hbm %s3289_s4, %s1814_s30 }
  0x3e   : > { %v686_v39 = vsel %vm313_vm5, %v685_v15, %v684_v33  ;;  %v302_v40 = vsel %vm301_vm1, %v300_v27, %v299_v34  ;;  %v1290_v41 = vld [vmem:[%s2213_s12 + $0x1b] sm:$0x1]  ;;  %v1291_v42 = vld [vmem:[%s2213_s12 + $0x23] sm:$0x1]  ;;  %v1292_v43 = vld [vmem:[%s2213_s12 + $0x2b] sm:$0x1] }
  0x3f   : > { %v688_v44 = vsel %vm316_vm6, %v687_v16, %v686_v39  ;;  %v305_v45 = vsel %vm304_vm2, %v303_v29, %v302_v40  ;;  %v1293_v46 = vld [vmem:[%s2213_s12 + $0x33] sm:$0x1]  ;;  %v1294_v47 = vld [vmem:[%s2213_s12 + $0x3b] sm:$0x1]  ;;  %v1311_v48 = vrot.slane %v1288_v37, 7  ;;  %v1313_v49 = vrot.slane %v1289_v38, 6 }
  0x40   : > { %v690_v50 = vsel %vm319_vm7, %v688_v44, 0.0  ;;  %v308_v51 = vsel %vm307_vm3, %v306_v30, %v305_v45  ;;  %v1315_v52 = vrot.slane %v1290_v41, 5  ;;  %v1317_v53 = vrot.slane %v1291_v42, 4  ;;  %v2308_v54 = vld [vmem:[%s2213_s12 + $0x5] sm:$0x1]  ;;  %s1618_s19 = sshll.u32 %s3176_s7, 4  ;;  %s1619_s19 = int_to_ptr.vmem [resolvable:$true] %s1618_s19 }
  0x41   : > { %691 = vadd.xlane.f32.xlu0 %v690_v50  ;;  %v311_v55 = vsel %vm310_vm4, %v309_v31, %v308_v51  ;;  %v1312_v56 = vsel %vm298_vm0, %v1311_v48, %v1287_v32  ;;  %v1319_v57 = vrot.slane %v1292_v43, 3  ;;  %v1321_v58 = vrot.slane %v1293_v46, 2  ;;  %v2313_v59 = vld [vmem:[%s2213_s12 + $0xd] sm:$0x1]  ;;  %v2316_v60 = vld [vmem:[%s2213_s12 + $0x15] sm:$0x1] }
  0x42   : > { %v314_v61 = vsel %vm313_vm5, %v312_v35, %v311_v55  ;;  %v1314_v62 = vsel %vm301_vm1, %v1313_v49, %v1312_v56  ;;  %v1323_v63 = vrot.slane %v1294_v47, 1  ;;  %v2321_v8 = vld [vmem:[%s2213_s12 + $0x1d] sm:$0x1]  ;;  %v2324_v9 = vld [vmem:[%s2213_s12 + $0x25] sm:$0x1]  ;;  %v701_v10 = vrot.slane %v2313_v59, 7 }
  0x43   : > { %v317_v11 = vsel %vm316_vm6, %v315_v36, %v314_v61  ;;  %v1316_v12 = vsel %vm304_vm2, %v1315_v52, %v1314_v62  ;;  %v2330_v14 = vld [vmem:[%s2213_s12 + $0x2d] sm:$0x1]  ;;  %v2333_v15 = vld [vmem:[%s2213_s12 + $0x35] sm:$0x1]  ;;  %v2336_v16 = vld [vmem:[%s2213_s12 + $0x3d] sm:$0x1] }
  0x44   : > { %v320_v19 = vsel %vm319_vm7, %v317_v11, 0.0  ;;  %v1318_v23 = vsel %vm307_vm3, %v1317_v53, %v1316_v12  ;;  %v702_v26 = vsel %vm298_vm0, %v701_v10, %v2308_v54  ;;  %v703_v27 = vrot.slane %v2316_v60, 6  ;;  %v2344_v28 = vld [vmem:[%s2213_s12 + $0xc] sm:$0x1]  ;;  %v2351_v33 = vld [vmem:[%s2213_s12 + $0x4] sm:$0x1] }
  0x45   : > { %321 = vadd.xlane.f32.xlu1 %v320_v19  ;;  %v1320_v29 = vsel %vm310_vm4, %v1319_v57, %v1318_v23  ;;  %v705_v30 = vrot.slane %v2321_v8, 5  ;;  %v707_v31 = vrot.slane %v2324_v9, 4  ;;  %v709_v32 = vrot.slane %v2330_v14, 3  ;;  %v2354_v34 = vld [vmem:[%s2213_s12 + $0x14] sm:$0x1]  ;;  %s1620_s24 = sshll.u32 %s1617_s9, 4  ;;  %s1621_s24 = int_to_ptr.hbm [resolvable:$true] %s1620_s24 }
  0x46   : > { %v1322_v35 = vsel %vm313_vm5, %v1321_v58, %v1320_v29  ;;  %v704_v36 = vsel %vm301_vm1, %v703_v27, %v702_v26  ;;  %v711_v37 = vrot.slane %v2333_v15, 2  ;;  %v713_v38 = vrot.slane %v2336_v16, 1  ;;  %v2361_v39 = vld [vmem:[%s2213_s12 + $0x1c] sm:$0x1]  ;;  %v2364_v40 = vld [vmem:[%s2213_s12 + $0x24] sm:$0x1] }
  0x47   : > { %v1324_v41 = vsel %vm316_vm6, %v1323_v63, %v1322_v35  ;;  %v706_v42 = vsel %vm304_vm2, %v705_v30, %v704_v36  ;;  %v2369_v43 = vld [vmem:[%s2213_s12 + $0x2c] sm:$0x1]  ;;  %v2372_v44 = vld [vmem:[%s2213_s12 + $0x34] sm:$0x1]  ;;  %v2375_v45 = vld [vmem:[%s2213_s12 + $0x3c] sm:$0x1] }
  0x48   : > { %v1326_v46 = vsel %vm319_vm7, %v1324_v41, 0.0  ;;  %v708_v47 = vsel %vm307_vm3, %v707_v31, %v706_v42  ;;  %v331_v48 = vrot.slane %v2344_v28, 7  ;;  %v333_v49 = vrot.slane %v2354_v34, 6  ;;  %v1789_v55 = vld [vmem:[%s2213_s12 + $0x7] sm:$0x1]  ;;  %s1606_s23 = scalar_lea.sflag [#allocation4], %s2209_s20 }
  0x49   : > { %1327 = vadd.xlane.f32.xlu2 %v1326_v46  ;;  %v710_v50 = vsel %vm310_vm4, %v709_v32, %v708_v47  ;;  %v335_v51 = vrot.slane %v2361_v39, 5  ;;  %v337_v52 = vrot.slane %v2364_v40, 4  ;;  %v339_v53 = vrot.slane %v2369_v43, 3  ;;  %v1790_v56 = vld [vmem:[%s2213_s12 + $0xf] sm:$0x1]  ;;  %s2015_s25 = sshra.s32 %s1621_s24, 4  ;;  %s2016_s25 = int_to_ptr.hbm [resolvable:$true] %s2015_s25 }
  0x4a   : > { %v712_v57 = vsel %vm313_vm5, %v711_v37, %v710_v50  ;;  %v332_v58 = vsel %vm298_vm0, %v331_v48, %v2351_v33  ;;  %v341_v61 = vrot.slane %v2372_v44, 2  ;;  %v343_v62 = vrot.slane %v2375_v45, 1  ;;  %v1791_v63 = vld [vmem:[%s2213_s12 + $0x17] sm:$0x1]  ;;  %v1792_v10 = vld [vmem:[%s2213_s12 + $0x1f] sm:$0x1]  ;;  %p2022_p11 = scmp.lt.s32.totalorder %s2016_s25, %s3289_s4 }
  0x4b   : > { %v714_v11 = vsel %vm316_vm6, %v713_v38, %v712_v57  ;;  %v334_v12 = vsel %vm301_vm1, %v333_v49, %v332_v58  ;;  %v1793_v19 = vld [vmem:[%s2213_s12 + $0x27] sm:$0x1]  ;;  %v1794_v23 = vld [vmem:[%s2213_s12 + $0x2f] sm:$0x1]  ;;  %v1795_v26 = vld [vmem:[%s2213_s12 + $0x37] sm:$0x1] }
  0x4c   : > { %v716_v27 = vsel %vm319_vm7, %v714_v11, 0.0  ;;  %v336_v29 = vsel %vm304_vm2, %v335_v51, %v334_v12  ;;  %v1796_v30 = vld [vmem:[%s2213_s12 + $0x3f] sm:$0x1]  ;;  %v1337_v31 = vrot.slane %v1790_v56, 7  ;;  %v1339_v32 = vrot.slane %v1791_v63, 6  ;;  %s2017_s27 = scalar_lea.hbm %s2016_s25, 32 }
  0x4d   : > { %717 = vadd.xlane.f32.xlu0 %v716_v27  ;;  %v338_v35 = vsel %vm307_vm3, %v337_v52, %v336_v29  ;;  %v1341_v36 = vrot.slane %v1792_v10, 5  ;;  %v1343_v37 = vrot.slane %v1793_v19, 4  ;;  %v1345_v38 = vrot.slane %v1794_v23, 3  ;;  %v2404_v41 = vld [vmem:[%s2213_s12 + $0x2] sm:$0x1]  ;;  %p2018_p1 = scmp.ne.s32.totalorder %s2016_s25, %s2017_s27  ;;  %s2021_s11 = scalar_lea.hbm %s3289_s4, 64 }
  0x4e   : > { %3318 = vst [vmem:[#allocation12_spill] sm:$0xff] %v2404_v41  ;;  %v340_v42 = vsel %vm310_vm4, %v339_v53, %v338_v35  ;;  %v1338_v46 = vsel %vm298_vm0, %v1337_v31, %v1789_v55  ;;  %v1347_v47 = vrot.slane %v1795_v26, 2  ;;  %v1349_v48 = vrot.slane %v1796_v30, 1  ;;  %v2409_v49 = vld [vmem:[%s2213_s12 + $0xa] sm:$0x1]  ;;  %p2023_p2 = scmp.lt.s32.totalorder %s2021_s11, %s2017_s27 }
  0x4f   : > { %3319 = vst [vmem:[#allocation13_spill] sm:$0xff] %v2409_v49  ;;  %v2412_v50 = vld [vmem:[%s2213_s12 + $0x12] sm:$0x1]  ;;  %v342_v51 = vsel %vm313_vm5, %v341_v61, %v340_v42  ;;  %v1340_v52 = vsel %vm301_vm1, %v1339_v32, %v1338_v46  ;;  %v2417_v56 = vld [vmem:[%s2213_s12 + $0x1a] sm:$0x1]  ;;  %v993_v61 = vrot.slane %v2409_v49, 7  ;;  %p2019_p4 = pnand %p2018_p1, %p2176_p3 }
  0x50   : > { %3320 = vst [vmem:[#allocation14_spill] sm:$0xff] %v2412_v50  ;;  %v2420_v57 = vld [vmem:[%s2213_s12 + $0x22] sm:$0x1]  ;;  %v2423_v58 = vld [vmem:[%s2213_s12 + $0x2a] sm:$0x1]  ;;  %v344_v53 = vsel %vm316_vm6, %v343_v62, %v342_v51  ;;  %v1342_v55 = vsel %vm304_vm2, %v1341_v36, %v1340_v52  ;;  %v995_v11 = vrot.slane %v2412_v50, 6  ;;  %p2024_p9 = por %p2023_p2, %p2022_p11 }
  0x51   : > { %3321 = vst [vmem:[#allocation15_spill] sm:$0xff] %v2417_v56  ;;  %v2428_v63 = vld [vmem:[%s2213_s12 + $0x32] sm:$0x1]  ;;  %v2431_v10 = vld [vmem:[%s2213_s12 + $0x3a] sm:$0x1]  ;;  %v346_v12 = vsel %vm319_vm7, %v344_v53, 0.0  ;;  %v1344_v19 = vsel %vm307_vm3, %v1343_v37, %v1342_v55  ;;  %v994_v29 = vsel %vm298_vm0, %v993_v61, %v2404_v41  ;;  %p2020_p8 = pneg %p2019_p4 }
  0x52   : > { %3322 = vst [vmem:[#allocation16_spill] sm:$0xff] %v2420_v57  ;;  %v997_v23 = vrot.slane %v2417_v56, 5  ;;  %v999_v62 = vrot.slane %v2420_v57, 4  ;;  %v2440_v26 = vld [vmem:[%s2213_s12 + $0x6] sm:$0x1]  ;;  %347 = vadd.xlane.f32.xlu1 %v346_v12  ;;  %v1346_v27 = vsel %vm310_vm4, %v1345_v38, %v1344_v19  ;;  %v1001_v30 = vrot.slane %v2423_v58, 3 }
  0x53   : > { %3323 = vst [vmem:[#allocation17_spill] sm:$0xff] %v2423_v58  ;;  %v2447_v31 = vld [vmem:[%s2213_s12 + $0xe] sm:$0x1]  ;;  %v2450_v32 = vld [vmem:[%s2213_s12 + $0x16] sm:$0x1]  ;;  %v1348_v35 = vsel %vm313_vm5, %v1347_v47, %v1346_v27  ;;  %v996_v36 = vsel %vm301_vm1, %v995_v11, %v994_v29  ;;  %v1003_v37 = vrot.slane %v2428_v63, 2  ;;  %p2025_p10 = pnand %p2024_p9, %p2020_p8 }
  0x54   : > { %3324 = vst [vmem:[#allocation18_spill] sm:$0xff] %v2428_v63  ;;  %v2456_v42 = vld [vmem:[%s2213_s12 + $0x1e] sm:$0x1]  ;;  %v2459_v46 = vld [vmem:[%s2213_s12 + $0x26] sm:$0x1]  ;;  %v1019_v38 = vrot.slane %v2447_v31, 7  ;;  %v1350_v51 = vsel %vm316_vm6, %v1349_v48, %v1348_v35  ;;  %v998_v52 = vsel %vm304_vm2, %v997_v23, %v996_v36 }
  0x55   : > { %3325 = vst [vmem:[#allocation19_spill] sm:$0xff] %v2431_v10  ;;  %v1005_v53 = vrot.slane %v2431_v10, 1  ;;  %v2466_v55 = vld [vmem:[%s2213_s12 + $0x2e] sm:$0x1]  ;;  %v2469_v61 = vld [vmem:[%s2213_s12 + $0x36] sm:$0x1]  ;;  %v1000_v11 = vsel %vm307_vm3, %v999_v62, %v998_v52 }
  0x56   : > { %3326 = vst [vmem:[#allocation20_spill] sm:$0xff] %v2440_v26  ;;  %v1352_v47 = vsel %vm319_vm7, %v1350_v51, 0.0  ;;  %v2474_v12 = vld [vmem:[%s2213_s12 + $0x3e] sm:$0x1]  ;;  %v1020_v19 = vsel %vm298_vm0, %v1019_v38, %v2440_v26  ;;  %v1021_v27 = vrot.slane %v2450_v32, 6  ;;  %v1002_v48 = vsel %vm310_vm4, %v1001_v30, %v1000_v11  ;;  %v2549_v56 = vld [vmem:[#allocation5] sm:$0xff] }
  0x57   : > { %3327 = vst [vmem:[#allocation21_spill] sm:$0xff] %v2447_v31  ;;  %1353 = vadd.xlane.f32.xlu2 %v1352_v47  ;;  %v1023_v23 = vrot.slane %v2456_v42, 5  ;;  %v1025_v29 = vrot.slane %v2459_v46, 4  ;;  %v1027_v35 = vrot.slane %v2466_v55, 3  ;;  %v1004_v36 = vsel %vm313_vm5, %v1003_v37, %v1002_v48  ;;  %v2503_v48 = vld [vmem:[#allocation7 + $0x10] sm:$0xff] }
  0x58   : > { %3328 = vst [vmem:[#allocation22_spill] sm:$0xff] %v2450_v32  ;;  %v1022_v62 = vsel %vm301_vm1, %v1021_v27, %v1020_v19  ;;  %v1029_v51 = vrot.slane %v2469_v61, 2  ;;  %v1006_v52 = vsel %vm316_vm6, %v1005_v53, %v1004_v36  ;;  %v1031_v47 = vrot.slane %v2474_v12, 1  ;;  %v2495_v27 = vld [vmem:[#allocation7 + $0x18] sm:$0xff] }
  0x59   : > { %3329 = vst [vmem:[#allocation23_spill] sm:$0xff] %v2456_v42  ;;  %v1024_v38 = vsel %vm304_vm2, %v1023_v23, %v1022_v62  ;;  %v1008_v30 = vsel %vm319_vm7, %v1006_v52, 0.0  ;;  %v2497_v53 = vld [vmem:[#allocation5 + $0x18] sm:$0xff]  ;;  %542 = vmatpush.bf16.msra.mxu0 %v2495_v27  ;;  %888 = vmatpush.bf16.msra.mxu2 %v2495_v27  ;;  %v2509_v23 = vld [vmem:[#allocation7 + $0x8] sm:$0xff] }
  0x5a   : > { %3330 = vst [vmem:[#allocation24_spill] sm:$0xff] %v2459_v46  ;;  %v1026_v11 = vsel %vm307_vm3, %v1025_v29, %v1024_v38  ;;  %1009 = vadd.xlane.f32.xlu0 %v1008_v30  ;;  %613 = vmatpush.bf16.msra.mxu1 %v2497_v53  ;;  %v2511_v29 = vld [vmem:[#allocation5 + $0x8] sm:$0xff] }
  0x5b   : > { %3331 = vst [vmem:[#allocation25_spill] sm:$0xff] %v2466_v55  ;;  %v1028_v10 = vsel %vm310_vm4, %v1027_v35, %v1026_v11  ;;  %935 = vmatpush.bf16.msra.mxu3 %v2497_v53 }
  0x5c   : > { %3332 = vst [vmem:[#allocation26_spill] sm:$0xff] %v2469_v61  ;;  %v1030_v63 = vsel %vm313_vm5, %v1029_v51, %v1028_v10  ;;  %v2505_v10 = vld [vmem:[#allocation5 + $0x10] sm:$0xff] }
  0x5d   : > { %3333 = vst [vmem:[#allocation27_spill] sm:$0xff] %v2474_v12  ;;  %v1032_v37 = vsel %vm316_vm6, %v1031_v47, %v1030_v63  ;;  %543 = vmatpush.bf16.msra.mxu0 %v2503_v48  ;;  %889 = vmatpush.bf16.msra.mxu2 %v2503_v48 }
  0x5e   : > { %v1034_v19 = vsel %vm319_vm7, %v1032_v37, 0.0  ;;  %614 = vmatpush.bf16.msra.mxu1 %v2505_v10 }
  0x5f   : > { %1035 = vadd.xlane.f32.xlu1 %v1034_v19  ;;  %936 = vmatpush.bf16.msra.mxu3 %v2505_v10 }
  0x61   : > { %544 = vmatpush.bf16.msra.mxu0 %v2509_v23  ;;  %890 = vmatpush.bf16.msra.mxu2 %v2509_v23 }
  0x62   : > { %615 = vmatpush.bf16.msra.mxu1 %v2511_v29 }
  0x63   : > { %937 = vmatpush.bf16.msra.mxu3 %v2511_v29 }
  0x66   : > { %616 = vmatpush.bf16.msra.mxu1 %v2549_v56 }
  0x67   : > { %938 = vmatpush.bf16.msra.mxu3 %v2549_v56 }
  0x6a   : > { %1253 = vmatpush.bf16.msrb.mxu1 %v2497_v53 }
  0x6b   : > { %1571 = vmatpush.bf16.msrb.mxu3 %v2497_v53 }
  0x6e   : > { %1254 = vmatpush.bf16.msrb.mxu1 %v2505_v10 }
  0x6f   : > { %1572 = vmatpush.bf16.msrb.mxu3 %v2505_v10 }
  0x72   : > { %1255 = vmatpush.bf16.msrb.mxu1 %v2511_v29 }
  0x73   : > { %1573 = vmatpush.bf16.msrb.mxu3 %v2511_v29 }
  0x76   : > { %1256 = vmatpush.bf16.msrb.mxu1 %v2549_v56 }
  0x77   : > { %1574 = vmatpush.bf16.msrb.mxu3 %v2549_v56 }
  0xb4   : > { %v692_v63 = vpop.xlane.xlu0 %691 }
  0xb8   : > { %v322_v35 = vpop.xlane.xlu1 %321 }
  0xbc   : > { %v1328_v36 = vpop.xlane.xlu2 %1327 }
  0xc0   : > { %v718_v62 = vpop.xlane.xlu0 %717 }
  0xc1   : > { %v719_v51 = vadd.f32 %v718_v62, %v692_v63 }
  0xc3   : > { %v2519_v52 = vmul.f32 0.0078125, %v719_v51 }
  0xc5   : > { %v348_v38 = vpop.xlane.xlu1 %347  ;;  %v3300_v47 = vrot.slane %v2519_v52, 1  ;;  %v3296_v30 = vrot.slane %v2519_v52, 2  ;;  %v3295_v11 = vrot.slane %v2519_v52, 3  ;;  %v3297_v37 = vrot.slane %v2519_v52, 4 }
  0xc6   : > { %v349_v19 = vadd.f32 %v348_v38, %v322_v35  ;;  %v3298_v58 = vrot.slane %v2519_v52, 5  ;;  %v3299_v57 = vrot.slane %v2519_v52, 6  ;;  %v2530_v63 = vsub.f32 %v2224_v0, %v2519_v52  ;;  %v2547_v38 = vld [vmem:[#allocation7] sm:$0xff] }
  0xc7   : > { %v2535_v62 = vsub.f32 %v2227_v1, %v3300_v47  ;;  %v2540_v51 = vsub.f32 %v2230_v2, %v3296_v30  ;;  %v2545_v35 = vsub.f32 %v2233_v3, %v3295_v11  ;;  %v2556_v1 = vsub.f32 %v2236_v4, %v3297_v37  ;;  %545 = vmatpush.bf16.msra.mxu0 %v2547_v38 }
  0xc8   : > { %v2551_v0 = vmul.f32 0.0078125, %v349_v19  ;;  %v2561_v2 = vsub.f32 %v2239_v5, %v3298_v58  ;;  %v2566_v3 = vsub.f32 %v2242_v6, %v3299_v57  ;;  %v3334_v30 = vrot.slane %v2519_v52, 7  ;;  %891 = vmatpush.bf16.msra.mxu2 %v2547_v38 }
  0xc9   : > { %v753_v4 = vmul.f32 %v2530_v63, %v2530_v63  ;;  %v754_v37 = vmul.f32 %v2535_v62, %v2535_v62  ;;  %v755_v5 = vmul.f32 %v2540_v51, %v2540_v51  ;;  %v756_v6 = vmul.f32 %v2545_v35, %v2545_v35 }
  0xca   : > { %v1354_v11 = vpop.xlane.xlu2 %1353  ;;  %v2571_v19 = vsub.f32 %v2245_v7, %v3334_v30  ;;  %v757_v57 = vmul.f32 %v2556_v1, %v2556_v1  ;;  %v758_v7 = vmul.f32 %v2561_v2, %v2561_v2  ;;  %v759_v30 = vmul.f32 %v2566_v3, %v2566_v3 }
  0xcb   : > { %v1355_v58 = vadd.f32 %v1354_v11, %v1328_v36  ;;  %v769_v50 = vrot.slane %v754_v37, 7  ;;  %v771_v49 = vrot.slane %v755_v5, 6  ;;  %v773_v11 = vrot.slane %v756_v6, 5  ;;  %1206 = vmatpush.bf16.msrb.mxu0 %v2495_v27 }
  0xcc   : > { %v760_v47 = vmul.f32 %v2571_v19, %v2571_v19  ;;  %v775_v41 = vrot.slane %v757_v57, 4  ;;  %v777_v12 = vrot.slane %v758_v7, 3  ;;  %v779_v55 = vrot.slane %v759_v30, 2  ;;  %1524 = vmatpush.bf16.msrb.mxu2 %v2495_v27 }
  0xcd   : > { %v2593_v36 = vmul.f32 0.0078125, %v1355_v58  ;;  %v770_v61 = vsel %vm298_vm0, %v769_v50, %v753_v4  ;;  %v352_v37 = vrot.slane %v2551_v0, 1  ;;  %v353_v5 = vrot.slane %v2551_v0, 2  ;;  %v1010_v7 = vpop.xlane.xlu0 %1009 }
  0xce   : > { %v781_v46 = vrot.slane %v760_v47, 1  ;;  %v772_v58 = vsel %vm301_vm1, %v771_v49, %v770_v61  ;;  %v354_v57 = vrot.slane %v2551_v0, 3  ;;  %v355_v6 = vrot.slane %v2551_v0, 4 }
  0xcf   : > { %3335 = vst [vmem:[#allocation28_spill] sm:$0xff] %v2593_v36  ;;  %v774_v36 = vsel %vm304_vm2, %v773_v11, %v772_v58  ;;  %v356_v50 = vrot.slane %v2551_v0, 5  ;;  %v357_v47 = vrot.slane %v2551_v0, 6  ;;  %v358_v4 = vrot.slane %v2551_v0, 7  ;;  %1207 = vmatpush.bf16.msrb.mxu0 %v2503_v48 }
  0xd0   : > { %v776_v27 = vsel %vm307_vm3, %v775_v41, %v774_v36  ;;  %v2612_v49 = vsub.f32 %v2351_v33, %v2551_v0  ;;  %v2615_v61 = vsub.f32 %v2344_v28, %v352_v37  ;;  %v2618_v53 = vsub.f32 %v2354_v34, %v353_v5  ;;  %1525 = vmatpush.bf16.msrb.mxu2 %v2503_v48 }
  0xd1   : > { %v778_v11 = vsel %vm310_vm4, %v777_v12, %v776_v27  ;;  %v2623_v58 = vsub.f32 %v2361_v39, %v354_v57  ;;  %v2626_v41 = vsub.f32 %v2364_v40, %v355_v6  ;;  %v2629_v33 = vsub.f32 %v2369_v43, %v356_v50 }
  0xd2   : > { %v1036_v30 = vpop.xlane.xlu1 %1035  ;;  %v780_v34 = vsel %vm313_vm5, %v779_v55, %v778_v11  ;;  %v2634_v36 = vsub.f32 %v2372_v44, %v357_v47  ;;  %v2637_v42 = vsub.f32 %v2375_v45, %v358_v4  ;;  %v417_v40 = vmul.f32 %v2612_v49, %v2612_v49 }
  0xd3   : > { %v1037_v28 = vadd.f32 %v1036_v30, %v1010_v7  ;;  %v782_v39 = vsel %vm316_vm6, %v781_v46, %v780_v34  ;;  %v418_v43 = vmul.f32 %v2615_v61, %v2615_v61  ;;  %v419_v12 = vmul.f32 %v2618_v53, %v2618_v53  ;;  %1208 = vmatpush.bf16.msrb.mxu0 %v2509_v23 }
  0xd4   : > { %v784_v45 = vsel %vm319_vm7, %v782_v39, 0.0  ;;  %v420_v55 = vmul.f32 %v2623_v58, %v2623_v58  ;;  %v421_v46 = vmul.f32 %v2626_v41, %v2626_v41  ;;  %v422_v48 = vmul.f32 %v2629_v33, %v2629_v33  ;;  %1526 = vmatpush.bf16.msrb.mxu2 %v2509_v23 }
  0xd5   : > { %v2648_v44 = vmul.f32 0.0078125, %v1037_v28  ;;  %785 = vadd.xlane.f32.xlu1 %v784_v45  ;;  %v423_v7 = vmul.f32 %v2634_v36, %v2634_v36  ;;  %v424_v10 = vmul.f32 %v2637_v42, %v2637_v42  ;;  %v433_v27 = vrot.slane %v418_v43, 7 }
  0xd6   : > { %v435_v30 = vrot.slane %v419_v12, 6  ;;  %v437_v11 = vrot.slane %v420_v55, 5  ;;  %v439_v28 = vrot.slane %v421_v46, 4  ;;  %v2665_v34 = vsub.f32 %v2253_v13, %v2551_v0 }
  0xd7   : > { %v434_v39 = vsel %vm298_vm0, %v433_v27, %v417_v40  ;;  %v441_v45 = vrot.slane %v422_v48, 3  ;;  %v443_v32 = vrot.slane %v423_v7, 2  ;;  %v445_v31 = vrot.slane %v424_v10, 1  ;;  %1209 = vmatpush.bf16.msrb.mxu0 %v2547_v38 }
  0xd8   : > { %v436_v43 = vsel %vm301_vm1, %v435_v30, %v434_v39  ;;  %v2672_v26 = vsub.f32 %v2260_v17, %v352_v37  ;;  %v2675_v12 = vsub.f32 %v2263_v18, %v353_v5  ;;  %v2678_v13 = vsub.f32 %v2267_v20, %v354_v57  ;;  %1527 = vmatpush.bf16.msrb.mxu2 %v2547_v38 }
  0xd9   : > { %v438_v23 = vsel %vm304_vm2, %v437_v11, %v436_v43  ;;  %v2683_v0 = vsub.f32 %v2270_v21, %v355_v6  ;;  %v2686_v29 = vsub.f32 %v2273_v22, %v356_v50  ;;  %v2689_v40 = vsub.f32 %v2277_v24, %v357_v47 }
  0xda   : > { %v440_v17 = vsel %vm307_vm3, %v439_v28, %v438_v23  ;;  %v2694_v18 = vsub.f32 %v2280_v25, %v358_v4  ;;  %v383_v20 = vmul.f32 %v2665_v34, %v2665_v34  ;;  %v384_v21 = vmul.f32 %v2672_v26, %v2672_v26 }
  0xdb   : > { %v442_v22 = vsel %vm310_vm4, %v441_v45, %v440_v17  ;;  %v385_v24 = vmul.f32 %v2675_v12, %v2675_v12  ;;  %v386_v37 = vmul.f32 %v2678_v13, %v2678_v13  ;;  %v387_v25 = vmul.f32 %v2683_v0, %v2683_v0 }
  0xdc   : > { %v444_v5 = vsel %vm313_vm5, %v443_v32, %v442_v22  ;;  %v388_v57 = vmul.f32 %v2686_v29, %v2686_v29  ;;  %v389_v38 = vmul.f32 %v2689_v40, %v2689_v40  ;;  %v390_v6 = vmul.f32 %v2694_v18, %v2694_v18 }
  0xdd   : > { %v446_v50 = vsel %vm316_vm6, %v445_v31, %v444_v5  ;;  %v399_v47 = vrot.slane %v384_v21, 7  ;;  %v401_v4 = vrot.slane %v385_v24, 6  ;;  %v403_v55 = vrot.slane %v386_v37, 5 }
  0xde   : > { %v448_v46 = vsel %vm319_vm7, %v446_v50, 0.0  ;;  %v405_v48 = vrot.slane %v387_v25, 4  ;;  %v407_v56 = vrot.slane %v388_v57, 3  ;;  %v409_v7 = vrot.slane %v389_v38, 2 }
  0xdf   : > { %449 = vadd.xlane.f32.xlu0 %v448_v46  ;;  %v400_v32 = vsel %vm298_vm0, %v399_v47, %v383_v20  ;;  %v411_v10 = vrot.slane %v390_v6, 1  ;;  %v472_v27 = vpack.c.bf16 %v2612_v49, %v2612_v49  ;;  %v473_v30 = vpack.c.bf16 %v2615_v61, %v2615_v61 }
  0xe0   : > { %v402_v31 = vsel %vm301_vm1, %v401_v4, %v400_v32  ;;  %v474_v11 = vpack.c.bf16 %v2618_v53, %v2618_v53  ;;  %v475_v28 = vpack.c.bf16 %v2623_v58, %v2623_v58  ;;  %v476_v39 = vpack.c.bf16 %v2626_v41, %v2626_v41 }
  0xe1   : > { %v404_v45 = vsel %vm304_vm2, %v403_v55, %v402_v31  ;;  %v477_v43 = vpack.c.bf16 %v2629_v33, %v2629_v33  ;;  %v478_v49 = vpack.c.bf16 %v2634_v36, %v2634_v36  ;;  %v479_v61 = vpack.c.bf16 %v2637_v42, %v2637_v42 }
  0xe2   : > { %v406_v23 = vsel %vm307_vm3, %v405_v48, %v404_v45  ;;  %v488_v53 = vunpack.c.l.b16 %v472_v27  ;;  %v489_v17 = vunpack.c.l.b16 %v473_v30  ;;  %v490_v20 = vunpack.c.l.b16 %v474_v11 }
  0xe3   : > { %v408_v58 = vsel %vm310_vm4, %v407_v56, %v406_v23  ;;  %v491_v21 = vunpack.c.l.b16 %v475_v28  ;;  %v492_v41 = vunpack.c.l.b16 %v476_v39  ;;  %v493_v22 = vunpack.c.l.b16 %v477_v43 }
  0xe4   : > { %v410_v24 = vsel %vm313_vm5, %v409_v7, %v408_v58  ;;  %v494_v37 = vunpack.c.l.b16 %v478_v49  ;;  %v495_v33 = vunpack.c.l.b16 %v479_v61  ;;  %v496_v25 = vrot.slane %v489_v17, 7 }
  0xe5   : > { %v412_v36 = vsel %vm316_vm6, %v411_v10, %v410_v24  ;;  %v498_v5 = vrot.slane %v490_v20, 6  ;;  %v500_v57 = vrot.slane %v491_v21, 5  ;;  %v502_v42 = vrot.slane %v492_v41, 4 }
  0xe6   : > { %v414_v38 = vsel %vm319_vm7, %v412_v36, 0.0  ;;  %v497_v6 = vsel %vm298_vm0, %v496_v25, %v488_v53  ;;  %v504_v50 = vrot.slane %v493_v22, 3  ;;  %v506_v47 = vrot.slane %v494_v37, 2 }
  0xe7   : > { %415 = vadd.xlane.f32.xlu2 %v414_v38  ;;  %v499_v4 = vsel %vm301_vm1, %v498_v5, %v497_v6  ;;  %v508_v55 = vrot.slane %v495_v33, 1  ;;  %v464_v46 = vpack.c.bf16 %v2665_v34, %v2665_v34  ;;  %v465_v48 = vpack.c.bf16 %v2672_v26, %v2672_v26 }
  0xe8   : > { %v501_v56 = vsel %vm304_vm2, %v500_v57, %v499_v4  ;;  %v466_v7 = vpack.c.bf16 %v2675_v12, %v2675_v12  ;;  %v467_v32 = vpack.c.bf16 %v2678_v13, %v2678_v13  ;;  %v468_v10 = vpack.c.bf16 %v2683_v0, %v2683_v0 }
  0xe9   : > { %v503_v27 = vsel %vm307_vm3, %v502_v42, %v501_v56  ;;  %v469_v30 = vpack.c.bf16 %v2686_v29, %v2686_v29  ;;  %v470_v34 = vpack.c.bf16 %v2689_v40, %v2689_v40  ;;  %v471_v26 = vpack.c.bf16 %v2694_v18, %v2694_v18 }
  0xea   : > { %v505_v31 = vsel %vm310_vm4, %v504_v50, %v503_v27  ;;  %v559_v12 = vunpack.c.l.b16 %v464_v46  ;;  %v560_v11 = vunpack.c.l.b16 %v465_v48  ;;  %v561_v28 = vunpack.c.l.b16 %v466_v7 }
  0xeb   : > { %v507_v13 = vsel %vm313_vm5, %v506_v47, %v505_v31  ;;  %v562_v39 = vunpack.c.l.b16 %v467_v32  ;;  %v563_v0 = vunpack.c.l.b16 %v468_v10  ;;  %v564_v45 = vunpack.c.l.b16 %v469_v30 }
  0xec   : > { %v509_v43 = vsel %vm316_vm6, %v508_v55, %v507_v13  ;;  %v565_v49 = vunpack.c.l.b16 %v470_v34  ;;  %v566_v29 = vunpack.c.l.b16 %v471_v26  ;;  %v567_v61 = vrot.slane %v560_v11, 7 }
  0xed   : > { %v510_v23 = vpack.c.b16 %v509_v43, %v509_v43  ;;  %v569_v40 = vrot.slane %v561_v28, 6  ;;  %v571_v53 = vrot.slane %v562_v39, 5  ;;  %v573_v17 = vrot.slane %v563_v0, 4 }
  0xee   : > { %v568_v18 = vsel %vm298_vm0, %v567_v61, %v559_v12  ;;  %v575_v20 = vrot.slane %v564_v45, 3  ;;  %v577_v58 = vrot.slane %v565_v49, 2  ;;  %v579_v21 = vrot.slane %v566_v29, 1 }
  0xef   : > { %1751 = vmatmul.msk.bf16.vlgmr.msra.gmra.mxu0 %vm319_vm7, %v510_v23  ;;  %v570_v41 = vsel %vm301_vm1, %v569_v40, %v568_v18  ;;  %v2770_v22 = vsub.f32 %v2308_v54, %v2519_v52  ;;  %v3336_v24 = vrot.slane %v2519_v52, 1  ;;  %v3337_v33 = vrot.slane %v2519_v52, 2 }
  0xf0   : > { %v572_v36 = vsel %vm304_vm2, %v571_v53, %v570_v41  ;;  %v3338_v5 = vrot.slane %v2519_v52, 3  ;;  %v3339_v54 = vrot.slane %v2519_v52, 4  ;;  %v3341_v6 = vrot.slane %v2519_v52, 6 }
  0xf1   : > { %v2775_v37 = vsub.f32 %v2313_v59, %v3336_v24  ;;  %v2780_v25 = vsub.f32 %v2316_v60, %v3337_v33  ;;  %v3340_v59 = vrot.slane %v2519_v52, 5  ;;  %v574_v60 = vsel %vm307_vm3, %v573_v17, %v572_v36 }
  0xf2   : > { %v2786_v57 = vsub.f32 %v2321_v8, %v3338_v5  ;;  %v2791_v42 = vsub.f32 %v2324_v9, %v3339_v54  ;;  %v2802_v50 = vsub.f32 %v2333_v15, %v3341_v6  ;;  %v3342_v8 = vrot.slane %v2519_v52, 7 }
  0xf3   : > { %v2796_v38 = vsub.f32 %v2330_v14, %v3340_v59  ;;  %v842_v9 = vpack.c.bf16 %v2770_v22, %v2770_v22  ;;  %v576_v4 = vsel %vm310_vm4, %v575_v20, %v574_v60  ;;  %v843_v14 = vpack.c.bf16 %v2775_v37, %v2775_v37 }
  0xf4   : > { %v2807_v47 = vsub.f32 %v2336_v16, %v3342_v8  ;;  %v844_v55 = vpack.c.bf16 %v2780_v25, %v2780_v25  ;;  %v845_v15 = vpack.c.bf16 %v2786_v57, %v2786_v57  ;;  %v578_v46 = vsel %vm313_vm5, %v577_v58, %v576_v4 }
  0xf5   : > { %v846_v16 = vpack.c.bf16 %v2791_v42, %v2791_v42  ;;  %v847_v52 = vpack.c.bf16 %v2796_v38, %v2796_v38  ;;  %v848_v48 = vpack.c.bf16 %v2802_v50, %v2802_v50  ;;  %v580_v56 = vsel %vm316_vm6, %v579_v21, %v578_v46 }
  0xf6   : > { %v849_v7 = vpack.c.bf16 %v2807_v47, %v2807_v47  ;;  %v858_v32 = vunpack.c.l.b16 %v842_v9  ;;  %v859_v10 = vunpack.c.l.b16 %v843_v14  ;;  %v581_v27 = vpack.c.b16 %v580_v56, %v580_v56 }
  0xf7   : > { %v860_v30 = vunpack.c.l.b16 %v844_v55  ;;  %v861_v34 = vunpack.c.l.b16 %v845_v15  ;;  %v862_v26 = vunpack.c.l.b16 %v846_v16  ;;  %v863_v31 = vunpack.c.l.b16 %v847_v52 }
  0xf8   : > { %v864_v12 = vunpack.c.l.b16 %v848_v48  ;;  %v865_v11 = vunpack.c.l.b16 %v849_v7  ;;  %v866_v28 = vrot.slane %v859_v10, 7  ;;  %1768 = vmatmul.msk.bf16.vlgmr.msra.gmra.mxu1 %vm319_vm7, %v581_v27  ;;  %v834_v45 = vpack.c.bf16 %v2530_v63, %v2530_v63 }
  0xf9   : > { %v868_v13 = vrot.slane %v860_v30, 6  ;;  %v870_v39 = vrot.slane %v861_v34, 5  ;;  %v872_v0 = vrot.slane %v862_v26, 4  ;;  %v874_v49 = vrot.slane %v863_v31, 3 }
  0xfa   : > { %v867_v43 = vsel %vm298_vm0, %v866_v28, %v858_v32  ;;  %v876_v29 = vrot.slane %v864_v12, 2  ;;  %v878_v61 = vrot.slane %v865_v11, 1  ;;  %v835_v40 = vpack.c.bf16 %v2535_v62, %v2535_v62 }
  0xfb   : > { %v869_v23 = vsel %vm301_vm1, %v868_v13, %v867_v43  ;;  %v836_v53 = vpack.c.bf16 %v2540_v51, %v2540_v51  ;;  %v837_v17 = vpack.c.bf16 %v2545_v35, %v2545_v35  ;;  %v838_v63 = vpack.c.bf16 %v2556_v1, %v2556_v1 }
  0xfc   : > { %v871_v18 = vsel %vm304_vm2, %v870_v39, %v869_v23  ;;  %v839_v20 = vpack.c.bf16 %v2561_v2, %v2561_v2  ;;  %v840_v58 = vpack.c.bf16 %v2566_v3, %v2566_v3  ;;  %v841_v62 = vpack.c.bf16 %v2571_v19, %v2571_v19  ;;  %v3343_v23 = vld [vmem:[#allocation20_spill] sm:$0xff] }
  0xfd   : > { %v873_v21 = vsel %vm307_vm3, %v872_v0, %v871_v18  ;;  %v905_v51 = vunpack.c.l.b16 %v834_v45  ;;  %v906_v41 = vunpack.c.l.b16 %v835_v40  ;;  %v907_v24 = vunpack.c.l.b16 %v836_v53 }
  0xfe   : > { %v875_v35 = vsel %vm310_vm4, %v874_v49, %v873_v21  ;;  %v908_v33 = vunpack.c.l.b16 %v837_v17  ;;  %v909_v36 = vunpack.c.l.b16 %v838_v63  ;;  %v910_v5 = vunpack.c.l.b16 %v839_v20  ;;  %v3344_v17 = vld [vmem:[#allocation21_spill] sm:$0xff]  ;;  %v3345_v63 = vld [vmem:[#allocation22_spill] sm:$0xff] }
  0xff   : > { %v877_v1 = vsel %vm313_vm5, %v876_v29, %v875_v35  ;;  %v911_v54 = vunpack.c.l.b16 %v840_v58  ;;  %v912_v2 = vunpack.c.l.b16 %v841_v62  ;;  %v913_v3 = vrot.slane %v906_v41, 7  ;;  %v3346_v58 = vld [vmem:[#allocation23_spill] sm:$0xff]  ;;  %v3348_v35 = vld [vmem:[#allocation25_spill] sm:$0xff] }
 0x100   : > { %v879_v59 = vsel %vm316_vm6, %v878_v61, %v877_v1  ;;  %v915_v60 = vrot.slane %v907_v24, 6  ;;  %v917_v6 = vrot.slane %v908_v33, 5  ;;  %v919_v9 = vrot.slane %v909_v36, 4  ;;  %v3349_v33 = vld [vmem:[#allocation26_spill] sm:$0xff] }
 0x101   : > { %v880_v8 = vpack.c.b16 %v879_v59, %v879_v59  ;;  %v921_v19 = vrot.slane %v910_v5, 3  ;;  %v923_v4 = vrot.slane %v911_v54, 2  ;;  %v914_v14 = vsel %vm298_vm0, %v913_v3, %v905_v51  ;;  %v3347_v51 = vld [vmem:[#allocation24_spill] sm:$0xff]  ;;  %v3350_v5 = vld [vmem:[#allocation27_spill] sm:$0xff] }
 0x102   : > { %v925_v55 = vrot.slane %v912_v2, 1  ;;  %v787_v15 = vmul.f32 %v2770_v22, %v2770_v22  ;;  %v788_v46 = vmul.f32 %v2775_v37, %v2775_v37  ;;  %v916_v16 = vsel %vm301_vm1, %v915_v60, %v914_v14 }
 0x103   : > { %1777 = vmatmul.msk.bf16.vlgmr.msra.gmra.mxu2 %vm319_vm7, %v880_v8  ;;  %v789_v52 = vmul.f32 %v2780_v25, %v2780_v25  ;;  %v790_v48 = vmul.f32 %v2786_v57, %v2786_v57  ;;  %v791_v56 = vmul.f32 %v2791_v42, %v2791_v42  ;;  %v918_v7 = vsel %vm304_vm2, %v917_v6, %v916_v16 }
 0x104   : > { %v792_v22 = vmul.f32 %v2796_v38, %v2796_v38  ;;  %v793_v37 = vmul.f32 %v2802_v50, %v2802_v50  ;;  %v794_v32 = vmul.f32 %v2807_v47, %v2807_v47  ;;  %v920_v10 = vsel %vm307_vm3, %v919_v9, %v918_v7 }
 0x105   : > { %v803_v25 = vrot.slane %v788_v46, 7  ;;  %v805_v27 = vrot.slane %v789_v52, 6  ;;  %v807_v30 = vrot.slane %v790_v48, 5  ;;  %v922_v57 = vsel %vm310_vm4, %v921_v19, %v920_v10 }
 0x106   : > { %v809_v34 = vrot.slane %v791_v56, 4  ;;  %v811_v42 = vrot.slane %v792_v22, 3  ;;  %v813_v26 = vrot.slane %v793_v37, 2  ;;  %v924_v31 = vsel %vm313_vm5, %v923_v4, %v922_v57 }
 0x107   : > { %v804_v38 = vsel %vm298_vm0, %v803_v25, %v787_v15  ;;  %v815_v12 = vrot.slane %v794_v32, 1  ;;  %v1040_v50 = vrot.slane %v2648_v44, 1  ;;  %v926_v11 = vsel %vm316_vm6, %v925_v55, %v924_v31 }
 0x108   : > { %v806_v47 = vsel %vm301_vm1, %v805_v27, %v804_v38  ;;  %v1041_v28 = vrot.slane %v2648_v44, 2  ;;  %v1042_v13 = vrot.slane %v2648_v44, 3  ;;  %v927_v39 = vpack.c.b16 %v926_v11, %v926_v11 }
 0x109   : > { %v808_v0 = vsel %vm304_vm2, %v807_v30, %v806_v47  ;;  %v1043_v45 = vrot.slane %v2648_v44, 4  ;;  %v1044_v43 = vrot.slane %v2648_v44, 5  ;;  %v1045_v29 = vrot.slane %v2648_v44, 6 }
 0x10a   : > { %v810_v49 = vsel %vm307_vm3, %v809_v34, %v808_v0  ;;  %v1046_v61 = vrot.slane %v2648_v44, 7  ;;  %v1063_v40 = vsub.f32 %v3343_v23, %v2648_v44  ;;  %1778 = vmatmul.msk.bf16.vlgmr.msra.gmra.mxu3 %vm319_vm7, %v927_v39  ;;  %v1064_v18 = vsub.f32 %v3344_v17, %v1040_v50 }
 0x10b   : > { %v812_v53 = vsel %vm310_vm4, %v811_v42, %v810_v49  ;;  %v1065_v20 = vsub.f32 %v3345_v63, %v1041_v28  ;;  %v1066_v21 = vsub.f32 %v3346_v58, %v1042_v13  ;;  %v1067_v41 = vsub.f32 %v3347_v51, %v1043_v45  ;;  %v3351_v51 = vld [vmem:[#allocation12_spill] sm:$0xff] }
 0x10c   : > { %v814_v62 = vsel %vm313_vm5, %v813_v26, %v812_v53  ;;  %v1068_v24 = vsub.f32 %v3348_v35, %v1044_v43  ;;  %v1069_v36 = vsub.f32 %v3349_v33, %v1045_v29  ;;  %v1070_v54 = vsub.f32 %v3350_v5, %v1046_v61  ;;  %v3352_v35 = vld [vmem:[#allocation13_spill] sm:$0xff]  ;;  %v3353_v33 = vld [vmem:[#allocation14_spill] sm:$0xff] }
 0x10d   : > { %v816_v1 = vsel %vm316_vm6, %v815_v12, %v814_v62  ;;  %v1105_v2 = vmul.f32 %v1063_v40, %v1063_v40  ;;  %v1106_v59 = vmul.f32 %v1064_v18, %v1064_v18  ;;  %v1107_v60 = vmul.f32 %v1065_v20, %v1065_v20 }
 0x10e   : > { %v818_v3 = vsel %vm319_vm7, %v816_v1, 0.0  ;;  %v1108_v6 = vmul.f32 %v1066_v21, %v1066_v21  ;;  %v1109_v8 = vmul.f32 %v1067_v41, %v1067_v41  ;;  %v1110_v9 = vmul.f32 %v1068_v24, %v1068_v24  ;;  %v3354_v1 = vld [vmem:[#allocation15_spill] sm:$0xff] }
 0x10f   : > { %819 = vadd.xlane.f32.xlu2 %v818_v3  ;;  %v1111_v19 = vmul.f32 %v1069_v36, %v1069_v36  ;;  %v1112_v4 = vmul.f32 %v1070_v54, %v1070_v54  ;;  %v1121_v14 = vrot.slane %v1106_v59, 7  ;;  %v1123_v55 = vrot.slane %v1107_v60, 6  ;;  %v3356_v59 = vld [vmem:[#allocation17_spill] sm:$0xff]  ;;  %v3357_v60 = vld [vmem:[#allocation18_spill] sm:$0xff] }
 0x110   : > { %v1125_v15 = vrot.slane %v1108_v6, 5  ;;  %v1127_v46 = vrot.slane %v1109_v8, 4  ;;  %v1160_v16 = vpack.c.bf16 %v1063_v40, %v1063_v40  ;;  %v1129_v48 = vrot.slane %v1110_v9, 3  ;;  %v3358_v6 = vld [vmem:[#allocation19_spill] sm:$0xff] }
 0x111   : > { %v1122_v52 = vsel %vm298_vm0, %v1121_v14, %v1105_v2  ;;  %v1131_v56 = vrot.slane %v1111_v19, 2  ;;  %v1133_v7 = vrot.slane %v1112_v4, 1  ;;  %v1161_v37 = vpack.c.bf16 %v1064_v18, %v1064_v18 }
 0x112   : > { %v1124_v22 = vsel %vm301_vm1, %v1123_v55, %v1122_v52  ;;  %v1162_v32 = vpack.c.bf16 %v1065_v20, %v1065_v20  ;;  %v1163_v10 = vpack.c.bf16 %v1066_v21, %v1066_v21  ;;  %v1164_v27 = vpack.c.bf16 %v1067_v41, %v1067_v41 }
 0x113   : > { %v1126_v25 = vsel %vm304_vm2, %v1125_v15, %v1124_v22  ;;  %v1165_v30 = vpack.c.bf16 %v1068_v24, %v1068_v24  ;;  %v1166_v57 = vpack.c.bf16 %v1069_v36, %v1069_v36  ;;  %v1167_v42 = vpack.c.bf16 %v1070_v54, %v1070_v54  ;;  %v3355_v54 = vld [vmem:[#allocation16_spill] sm:$0xff] }
 0x114   : > { %v1128_v34 = vsel %vm307_vm3, %v1127_v46, %v1126_v25  ;;  %v2919_v26 = vunpack.c.l.b16 %v1160_v16  ;;  %v2921_v31 = vunpack.c.l.b16 %v1161_v37  ;;  %v2924_v12 = vunpack.c.l.b16 %v1162_v32 }
 0x115   : > { %v1130_v38 = vsel %vm310_vm4, %v1129_v48, %v1128_v34  ;;  %v2926_v11 = vunpack.c.l.b16 %v1163_v10  ;;  %v2928_v47 = vunpack.c.l.b16 %v1164_v27  ;;  %v2931_v0 = vunpack.c.l.b16 %v1165_v30 }
 0x116   : > { %v1132_v39 = vsel %vm313_vm5, %v1131_v56, %v1130_v38  ;;  %v2933_v49 = vunpack.c.l.b16 %v1166_v57  ;;  %v2935_v23 = vunpack.c.l.b16 %v1167_v42  ;;  %v1184_v53 = vrot.slane %v2921_v31, 7 }
 0x117   : > { %v1134_v40 = vsel %vm316_vm6, %v1133_v7, %v1132_v39  ;;  %v1186_v17 = vrot.slane %v2924_v12, 6  ;;  %v1188_v18 = vrot.slane %v2926_v11, 5  ;;  %v1055_v41 = vsub.f32 %v3351_v51, %v2648_v44 }
 0x118   : > { %v1136_v63 = vsel %vm319_vm7, %v1134_v40, 0.0  ;;  %v1056_v24 = vsub.f32 %v3352_v35, %v1040_v50  ;;  %v1057_v36 = vsub.f32 %v3353_v33, %v1041_v28  ;;  %v1058_v5 = vsub.f32 %v3354_v1, %v1042_v13 }
 0x119   : > { %1137 = vadd.xlane.f32.xlu1 %v1136_v63  ;;  %v1059_v2 = vsub.f32 %v3355_v54, %v1043_v45  ;;  %v1060_v3 = vsub.f32 %v3356_v59, %v1044_v43  ;;  %v1061_v50 = vsub.f32 %v3357_v60, %v1045_v29  ;;  %v1062_v28 = vsub.f32 %v3358_v6, %v1046_v61 }
 0x11a   : > { %v1071_v8 = vmul.f32 %v1055_v41, %v1055_v41  ;;  %v1072_v9 = vmul.f32 %v1056_v24, %v1056_v24  ;;  %v1073_v19 = vmul.f32 %v1057_v36, %v1057_v36  ;;  %v1074_v13 = vmul.f32 %v1058_v5, %v1058_v5 }
 0x11b   : > { %v1075_v4 = vmul.f32 %v1059_v2, %v1059_v2  ;;  %v1076_v14 = vmul.f32 %v1060_v3, %v1060_v3  ;;  %v1077_v55 = vmul.f32 %v1061_v50, %v1061_v50  ;;  %v1078_v45 = vmul.f32 %v1062_v28, %v1062_v28 }
 0x11c   : > { %v1087_v15 = vrot.slane %v1072_v9, 7  ;;  %v1089_v46 = vrot.slane %v1073_v19, 6  ;;  %v1152_v16 = vpack.c.bf16 %v1055_v41, %v1055_v41  ;;  %v1091_v43 = vrot.slane %v1074_v13, 5 }
 0x11d   : > { %v1093_v52 = vrot.slane %v1075_v4, 4  ;;  %v1095_v48 = vrot.slane %v1076_v14, 3  ;;  %v1097_v56 = vrot.slane %v1077_v55, 2  ;;  %v1099_v44 = vrot.slane %v1078_v45, 1  ;;  %v1895_v14 = vld [vmem:[%s2213_s12 + $0x3] sm:$0x1] }
 0x11e   : > { %v1088_v29 = vsel %vm298_vm0, %v1087_v15, %v1071_v8  ;;  %v1153_v7 = vpack.c.bf16 %v1056_v24, %v1056_v24  ;;  %v1154_v61 = vpack.c.bf16 %v1057_v36, %v1057_v36  ;;  %v1155_v37 = vpack.c.bf16 %v1058_v5, %v1058_v5  ;;  %v1896_v45 = vld [vmem:[%s2213_s12 + $0xb] sm:$0x1] }
 0x11f   : > { %v1090_v22 = vsel %vm301_vm1, %v1089_v46, %v1088_v29  ;;  %v1156_v32 = vpack.c.bf16 %v1059_v2, %v1059_v2  ;;  %v1157_v10 = vpack.c.bf16 %v1060_v3, %v1060_v3  ;;  %v1158_v27 = vpack.c.bf16 %v1061_v50, %v1061_v50  ;;  %v3359_v50 = vld [vmem:[#allocation28_spill] sm:$0xff]  ;;  %v1897_v46 = vld [vmem:[%s2213_s12 + $0x13] sm:$0x1]  ;;  %v1900_v29 = vld [vmem:[%s2213_s12 + $0x2b] sm:$0x1] }
 0x120   : > { %v1092_v25 = vsel %vm304_vm2, %v1091_v43, %v1090_v22  ;;  %v1159_v30 = vpack.c.bf16 %v1062_v28, %v1062_v28  ;;  %v2972_v57 = vunpack.c.l.b16 %v1152_v16  ;;  %v2975_v42 = vunpack.c.l.b16 %v1153_v7  ;;  %v1898_v43 = vld [vmem:[%s2213_s12 + $0x1b] sm:$0x1]  ;;  %v1901_v7 = vld [vmem:[%s2213_s12 + $0x33] sm:$0x1] }
 0x121   : > { %v1094_v34 = vsel %vm307_vm3, %v1093_v52, %v1092_v25  ;;  %v2977_v38 = vunpack.c.l.b16 %v1154_v61  ;;  %v2979_v39 = vunpack.c.l.b16 %v1155_v37  ;;  %v2982_v63 = vunpack.c.l.b16 %v1156_v32  ;;  %v1902_v22 = vld [vmem:[%s2213_s12 + $0x3b] sm:$0x1] }
 0x122   : > { %v1096_v40 = vsel %vm310_vm4, %v1095_v48, %v1094_v34  ;;  %v2984_v51 = vunpack.c.l.b16 %v1157_v10  ;;  %v2986_v41 = vunpack.c.l.b16 %v1158_v27  ;;  %v2989_v24 = vunpack.c.l.b16 %v1159_v30  ;;  %v1899_v48 = vld [vmem:[%s2213_s12 + $0x23] sm:$0x1] }
 0x123   : > { %v1098_v35 = vsel %vm313_vm5, %v1097_v56, %v1096_v40  ;;  %v1231_v33 = vrot.slane %v2975_v42, 7  ;;  %v1233_v36 = vrot.slane %v2977_v38, 6  ;;  %v1235_v5 = vrot.slane %v2979_v39, 5 }
 0x124   : > { %v1100_v1 = vsel %vm316_vm6, %v1099_v44, %v1098_v35  ;;  %v1358_v6 = vrot.slane %v3359_v50, 1  ;;  %v1359_v28 = vrot.slane %v3359_v50, 2  ;;  %v1360_v8 = vrot.slane %v3359_v50, 3 }
 0x125   : > { %v1102_v59 = vsel %vm319_vm7, %v1100_v1, 0.0  ;;  %v1361_v9 = vrot.slane %v3359_v50, 4  ;;  %v1362_v19 = vrot.slane %v3359_v50, 5  ;;  %v1363_v13 = vrot.slane %v3359_v50, 6 }
 0x126   : > { %1103 = vadd.xlane.f32.xlu0 %v1102_v59  ;;  %v1364_v4 = vrot.slane %v3359_v50, 7  ;;  %v1373_v55 = vsub.f32 %v1895_v14, %v3359_v50  ;;  %v1374_v15 = vsub.f32 %v1896_v45, %v1358_v6  ;;  %v1375_v16 = vsub.f32 %v1897_v46, %v1359_v28 }
 0x127   : > { %v1376_v52 = vsub.f32 %v1898_v43, %v1360_v8  ;;  %v1377_v56 = vsub.f32 %v1899_v48, %v1361_v9  ;;  %v1378_v44 = vsub.f32 %v1900_v29, %v1362_v19  ;;  %v1379_v61 = vsub.f32 %v1901_v7, %v1363_v13 }
 0x128   : > { %v1380_v37 = vsub.f32 %v1902_v22, %v1364_v4  ;;  %v1389_v32 = vmul.f32 %v1373_v55, %v1373_v55  ;;  %v1390_v10 = vmul.f32 %v1374_v15, %v1374_v15  ;;  %v1391_v25 = vmul.f32 %v1375_v16, %v1375_v16 }
 0x129   : > { %v1392_v27 = vmul.f32 %v1376_v52, %v1376_v52  ;;  %v1393_v30 = vmul.f32 %v1377_v56, %v1377_v56  ;;  %v1394_v34 = vmul.f32 %v1378_v44, %v1378_v44  ;;  %v1395_v40 = vmul.f32 %v1379_v61, %v1379_v61 }
 0x12a   : > { %v1396_v35 = vmul.f32 %v1380_v37, %v1380_v37  ;;  %v1405_v1 = vrot.slane %v1390_v10, 7  ;;  %v1470_v59 = vpack.c.bf16 %v1373_v55, %v1373_v55  ;;  %v1407_v14 = vrot.slane %v1391_v25, 6 }
 0x12b   : > { %v1409_v45 = vrot.slane %v1392_v27, 5  ;;  %v1411_v46 = vrot.slane %v1393_v30, 4  ;;  %v1413_v43 = vrot.slane %v1394_v34, 3  ;;  %v1415_v29 = vrot.slane %v1395_v40, 2  ;;  %v1903_v40 = vld [vmem:[%s2213_s12 + $0x7] sm:$0x1] }
 0x12c   : > { %v1406_v48 = vsel %vm298_vm0, %v1405_v1, %v1389_v32  ;;  %v1417_v7 = vrot.slane %v1396_v35, 1  ;;  %v1471_v60 = vpack.c.bf16 %v1374_v15, %v1374_v15  ;;  %v1472_v62 = vpack.c.bf16 %v1375_v16, %v1375_v16  ;;  %v1904_v1 = vld [vmem:[%s2213_s12 + $0xf] sm:$0x1] }
 0x12d   : > { %v1408_v22 = vsel %vm301_vm1, %v1407_v14, %v1406_v48  ;;  %v1473_v3 = vpack.c.bf16 %v1376_v52, %v1376_v52  ;;  %v1474_v21 = vpack.c.bf16 %v1377_v56, %v1377_v56  ;;  %v1475_v58 = vpack.c.bf16 %v1378_v44, %v1378_v44  ;;  %v1905_v14 = vld [vmem:[%s2213_s12 + $0x17] sm:$0x1]  ;;  %v1907_v48 = vld [vmem:[%s2213_s12 + $0x27] sm:$0x1] }
 0x12e   : > { %v1410_v2 = vsel %vm304_vm2, %v1409_v45, %v1408_v22  ;;  %v1476_v54 = vpack.c.bf16 %v1379_v61, %v1379_v61  ;;  %v1477_v10 = vpack.c.bf16 %v1380_v37, %v1380_v37  ;;  %v3034_v25 = vunpack.c.l.b16 %v1470_v59 }
 0x12f   : > { %v1412_v55 = vsel %vm307_vm3, %v1411_v46, %v1410_v2  ;;  %v3036_v27 = vunpack.c.l.b16 %v1471_v60  ;;  %v3038_v32 = vunpack.c.l.b16 %v1472_v62  ;;  %v3041_v30 = vunpack.c.l.b16 %v1473_v3  ;;  %v1906_v46 = vld [vmem:[%s2213_s12 + $0x1f] sm:$0x1] }
 0x130   : > { %v1414_v15 = vsel %vm310_vm4, %v1413_v43, %v1412_v55  ;;  %v3043_v16 = vunpack.c.l.b16 %v1474_v21  ;;  %v3045_v52 = vunpack.c.l.b16 %v1475_v58  ;;  %v3048_v44 = vunpack.c.l.b16 %v1476_v54  ;;  %v1910_v55 = vld [vmem:[%s2213_s12 + $0x3f] sm:$0x1] }
 0x131   : > { %v1416_v56 = vsel %vm313_vm5, %v1415_v29, %v1414_v15  ;;  %v3050_v2 = vunpack.c.l.b16 %v1477_v10  ;;  %v1549_v62 = vrot.slane %v3036_v27, 7  ;;  %v1381_v35 = vsub.f32 %v1903_v40, %v3359_v50  ;;  %v1909_v10 = vld [vmem:[%s2213_s12 + $0x37] sm:$0x1] }
 0x132   : > { %v1418_v60 = vsel %vm316_vm6, %v1417_v7, %v1416_v56  ;;  %v1382_v59 = vsub.f32 %v1904_v1, %v1358_v6  ;;  %v1383_v45 = vsub.f32 %v1905_v14, %v1359_v28  ;;  %v1384_v43 = vsub.f32 %v1906_v46, %v1360_v8  ;;  %v1908_v7 = vld [vmem:[%s2213_s12 + $0x2f] sm:$0x1] }
 0x133   : > { %v1420_v61 = vsel %vm319_vm7, %v1418_v60, 0.0  ;;  %v1385_v29 = vsub.f32 %v1907_v48, %v1361_v9  ;;  %v1386_v22 = vsub.f32 %v1908_v7, %v1362_v19  ;;  %v1387_v6 = vsub.f32 %v1909_v10, %v1363_v13 }
 0x134   : > { %1421 = vadd.xlane.f32.xlu2 %v1420_v61  ;;  %v1388_v28 = vsub.f32 %v1910_v55, %v1364_v4  ;;  %v1423_v15 = vmul.f32 %v1381_v35, %v1381_v35  ;;  %v1424_v56 = vmul.f32 %v1382_v59, %v1382_v59  ;;  %v1425_v60 = vmul.f32 %v1383_v45, %v1383_v45 }
 0x135   : > { %v1426_v8 = vmul.f32 %v1384_v43, %v1384_v43  ;;  %v1427_v61 = vmul.f32 %v1385_v29, %v1385_v29  ;;  %v1428_v40 = vmul.f32 %v1386_v22, %v1386_v22  ;;  %v1429_v1 = vmul.f32 %v1387_v6, %v1387_v6 }
 0x136   : > { %v1430_v9 = vmul.f32 %v1388_v28, %v1388_v28  ;;  %v1439_v14 = vrot.slane %v1424_v56, 7  ;;  %v1441_v46 = vrot.slane %v1425_v60, 6  ;;  %v1478_v19 = vpack.c.bf16 %v1381_v35, %v1381_v35 }
 0x137   : > { %v1443_v48 = vrot.slane %v1426_v8, 5  ;;  %v1445_v7 = vrot.slane %v1427_v61, 4  ;;  %v1447_v34 = vrot.slane %v1428_v40, 3  ;;  %v1449_v37 = vrot.slane %v1429_v1, 2 }
 0x138   : > { %v1451_v13 = vrot.slane %v1430_v9, 1  ;;  %v1440_v10 = vsel %vm298_vm0, %v1439_v14, %v1423_v15  ;;  %v1479_v50 = vpack.c.bf16 %v1382_v59, %v1382_v59  ;;  %v1480_v4 = vpack.c.bf16 %v1383_v45, %v1383_v45 }
 0x139   : > { %v1481_v55 = vpack.c.bf16 %v1384_v43, %v1384_v43  ;;  %v1442_v54 = vsel %vm301_vm1, %v1441_v46, %v1440_v10  ;;  %v1482_v58 = vpack.c.bf16 %v1385_v29, %v1385_v29  ;;  %v1483_v21 = vpack.c.bf16 %v1386_v22, %v1386_v22 }
 0x13a   : > { %v1484_v20 = vpack.c.bf16 %v1387_v6, %v1387_v6  ;;  %v1444_v3 = vsel %vm304_vm2, %v1443_v48, %v1442_v54  ;;  %v1485_v56 = vpack.c.bf16 %v1388_v28, %v1388_v28  ;;  %v1494_v60 = vunpack.c.l.b16 %v1478_v19 }
 0x13b   : > { %v1495_v8 = vunpack.c.l.b16 %v1479_v50  ;;  %v1446_v35 = vsel %vm307_vm3, %v1445_v7, %v1444_v3  ;;  %v1496_v61 = vunpack.c.l.b16 %v1480_v4  ;;  %v1497_v40 = vunpack.c.l.b16 %v1481_v55 }
 0x13c   : > { %v1498_v1 = vunpack.c.l.b16 %v1482_v58  ;;  %v1448_v15 = vsel %vm310_vm4, %v1447_v34, %v1446_v35  ;;  %v1499_v59 = vunpack.c.l.b16 %v1483_v21  ;;  %v1500_v45 = vunpack.c.l.b16 %v1484_v20 }
 0x13d   : > { %v1501_v43 = vunpack.c.l.b16 %v1485_v56  ;;  %v1450_v9 = vsel %vm313_vm5, %v1449_v37, %v1448_v15  ;;  %v1502_v29 = vrot.slane %v1495_v8, 7  ;;  %v1504_v22 = vrot.slane %v1496_v61, 6 }
 0x13e   : > { %v1506_v6 = vrot.slane %v1497_v40, 5  ;;  %v1452_v54 = vsel %vm316_vm6, %v1451_v13, %v1450_v9  ;;  %v1508_v28 = vrot.slane %v1498_v1, 4  ;;  %v1510_v14 = vrot.slane %v1499_v59, 3 }
 0x13f   : > { %v1512_v46 = vrot.slane %v1500_v45, 2  ;;  %v1454_v3 = vsel %vm319_vm7, %v1452_v54, 0.0  ;;  %v1514_v48 = vrot.slane %v1501_v43, 1  ;;  %v1185_v21 = vsel %vm298_vm0, %v1184_v53, %v2919_v26 }
 0x140   : > { %v1232_v20 = vsel %vm298_vm0, %v1231_v33, %v2972_v57  ;;  %1455 = vadd.xlane.f32.xlu0 %v1454_v3  ;;  %v1187_v58 = vsel %vm301_vm1, %v1186_v17, %v1185_v21  ;;  %v1503_v34 = vsel %vm298_vm0, %v1502_v29, %v1494_v60  ;;  %v1550_v26 = vsel %vm298_vm0, %v1549_v62, %v3034_v25 }
 0x141   : > { %v1234_v37 = vsel %vm301_vm1, %v1233_v36, %v1232_v20  ;;  %v1189_v31 = vsel %vm304_vm2, %v1188_v18, %v1187_v58  ;;  %v1505_v53 = vsel %vm301_vm1, %v1504_v22, %v1503_v34  ;;  %v3360_v17 = vrot.slane %v3038_v32, 6  ;;  %v3173_v20 = vld [vmem:[%s3288_s3] ss:$0 sm:$0xff] }
 0x142   : > { %v1236_v12 = vsel %vm304_vm2, %v1235_v5, %v1234_v37  ;;  %v3361_v42 = vrot.slane %v2928_v47, 4  ;;  %v3362_v33 = vrot.slane %v2982_v63, 4  ;;  %v1507_v18 = vsel %vm304_vm2, %v1506_v6, %v1505_v53 }
 0x143   : > { %v1552_v57 = vsel %vm301_vm1, %v3360_v17, %v1550_v26  ;;  %v3363_v39 = vrot.slane %v3041_v30, 5  ;;  %v3364_v5 = vrot.slane %v2931_v0, 3  ;;  %v3365_v27 = vrot.slane %v2984_v51, 3 }
 0x144   : > { %v1191_v38 = vsel %vm307_vm3, %v3361_v42, %v1189_v31  ;;  %v1238_v11 = vsel %vm307_vm3, %v3362_v33, %v1236_v12  ;;  %v1509_v32 = vsel %vm307_vm3, %v1508_v28, %v1507_v18  ;;  %v3366_v63 = vrot.slane %v3043_v16, 4 }
 0x145   : > { %v1554_v36 = vsel %vm304_vm2, %v3363_v39, %v1552_v57  ;;  %v1193_v25 = vsel %vm310_vm4, %v3364_v5, %v1191_v38  ;;  %v1240_v47 = vsel %vm310_vm4, %v3365_v27, %v1238_v11  ;;  %v3367_v19 = vrot.slane %v2933_v49, 2 }
 0x146   : > { %v1556_v62 = vsel %vm307_vm3, %v3366_v63, %v1554_v36  ;;  %v3368_v7 = vrot.slane %v2986_v41, 2  ;;  %v1511_v13 = vsel %vm310_vm4, %v1510_v14, %v1509_v32  ;;  %v3369_v51 = vrot.slane %v3045_v52, 3 }
 0x147   : > { %v1195_v30 = vsel %vm313_vm5, %v3367_v19, %v1193_v25  ;;  %v3370_v50 = vrot.slane %v2935_v23, 1  ;;  %v3371_v4 = vrot.slane %v2989_v24, 1  ;;  %v1513_v55 = vsel %vm313_vm5, %v1512_v46, %v1511_v13 }
 0x148   : > { %v1242_v0 = vsel %vm313_vm5, %v3368_v7, %v1240_v47  ;;  %v1558_v10 = vsel %vm310_vm4, %v3369_v51, %v1556_v62  ;;  %v3372_v41 = vrot.slane %v3048_v44, 2  ;;  %v1515_v52 = vsel %vm316_vm6, %v1514_v48, %v1513_v55  ;;  %v786_v29 = vpop.xlane.xlu1 %785 }
 0x149   : > { %v1197_v16 = vsel %vm316_vm6, %v3370_v50, %v1195_v30  ;;  %v1244_v49 = vsel %vm316_vm6, %v3371_v4, %v1242_v0  ;;  %v3373_v35 = vrot.slane %v3050_v2, 1  ;;  %v1516_v61 = vpack.c.b16 %v1515_v52, %v1515_v52 }
 0x14a   : > { %v1560_v56 = vsel %vm313_vm5, %v3372_v41, %v1558_v10  ;;  %v1198_v60 = vpack.c.b16 %v1197_v16, %v1197_v16  ;;  %v1245_v8 = vpack.c.b16 %v1244_v49, %v1244_v49 }
 0x14b   : > { %v1562_v23 = vsel %vm316_vm6, %v3373_v35, %v1560_v56  ;;  %1797 = vmatmul.msk.bf16.vlgmr.msrb.gmra.mxu2 %vm319_vm7, %v1516_v61 }
 0x14c   : > { %v1563_v40 = vpack.c.b16 %v1562_v23, %v1562_v23  ;;  %1787 = vmatmul.msk.bf16.vlgmr.msrb.gmra.mxu0 %vm319_vm7, %v1198_v60  ;;  %1788 = vmatmul.msk.bf16.vlgmr.msrb.gmra.mxu1 %vm319_vm7, %v1245_v8 }
 0x14e   : > { %1798 = vmatmul.msk.bf16.vlgmr.msrb.gmra.mxu3 %vm319_vm7, %v1563_v40 }
 0x152   : > { %v450_v24 = vpop.xlane.xlu0 %449 }
 0x15a   : > { %v416_v44 = vpop.xlane.xlu2 %415 }
 0x15b   : > { %v451_v1 = vadd.f32 %v450_v24, %v416_v44 }
 0x15d   : > { %v452_v15 = vmul.f32 0.0078125, %v451_v1 }
 0x15f   : > { %v453_v59 = vadd.f32 1e-05, %v452_v15 }
 0x161   : > { %1887 = vrsqrt.f32 %v453_v59  ;;  %vm460_vm8 = vweird.f32 %v453_v59 }
 0x167   : > { %v1888_v2 = vpop.eup %1887 }
 0x168   : > { %v455_v45 = vmul.f32 %v1888_v2, %v453_v59  ;;  %vm461_vm9 = vweird.f32 %v1888_v2 }
 0x169   : > { %vm462_vm10 = vmor %vm460_vm8, %vm461_vm9 }
 0x16a   : > { %v456_v43 = vmul.f32 %v1888_v2, %v455_v45 }
 0x16c   : > { %v457_v22 = vmul.f32 0.5, %v456_v43  ;;  %v547_v46 = vpop.f32.mrf.mxu0 }
 0x16e   : > { %v458_v54 = vsub.f32 1.5, %v457_v22 }
 0x170   : > { %v459_v3 = vmul.f32 %v1888_v2, %v458_v54 }
 0x172   : > { %v463_v58 = vsel %vm462_vm10, %v1888_v2, %v459_v3 }
 0x174   : > { %v549_v17 = vpop.f32.mrf.mxu0 }
 0x175   : > { %v618_v48 = vpop.f32.mrf.mxu1 }
 0x176   : > { %v619_v21 = vadd.f32 %v618_v48, %v547_v46 }
 0x178   : > { %v622_v37 = vmul.f32 %v619_v21, %v463_v58 }
 0x17a   : > { %v626_v34 = vadd.f32 %v3173_v20, %v622_v37 }
 0x17c   : > { %v628_v26 = vrot.slane %v626_v34, 1  ;;  %v629_v31 = vrot.slane %v626_v34, 2  ;;  %v630_v12 = vrot.slane %v626_v34, 3  ;;  %643 = vst.msk [vmem:[%s3176_s7] sm:$0x1] %vm642_vm11, %v626_v34  ;;  %v631_v53 = vrot.slane %v626_v34, 4 }
 0x17d   : > { %v620_v57 = vpop.f32.mrf.mxu1  ;;  %v632_v42 = vrot.slane %v626_v34, 5  ;;  %v633_v33 = vrot.slane %v626_v34, 6  ;;  %v634_v11 = vrot.slane %v626_v34, 7 }
 0x17e   : > { %644 = vst.msk [vmem:[%s3176_s7 + $0x4] sm:$0x1] %vm642_vm11, %v628_v26 }
 0x17f   : > { %645 = vst.msk [vmem:[%s3176_s7 + $0x8] sm:$0x1] %vm642_vm11, %v629_v31 }
 0x180   : > { %646 = vst.msk [vmem:[%s3176_s7 + $0xc] sm:$0x1] %vm642_vm11, %v630_v12 }
 0x181   : > { %647 = vst.msk [vmem:[%s3176_s7 + $0x10] sm:$0x1] %vm642_vm11, %v631_v53 }
 0x182   : > { %v820_v9 = vpop.xlane.xlu2 %819  ;;  %648 = vst.msk [vmem:[%s3176_s7 + $0x14] sm:$0x1] %vm642_vm11, %v632_v42 }
 0x183   : > { %v821_v6 = vadd.f32 %v820_v9, %v786_v29  ;;  %649 = vst.msk [vmem:[%s3176_s7 + $0x18] sm:$0x1] %vm642_vm11, %v633_v33 }
 0x184   : > { %650 = vst.msk [vmem:[%s3176_s7 + $0x1c] sm:$0x1] %vm642_vm11, %v634_v11 }
 0x185   : > { %v822_v28 = vmul.f32 0.0078125, %v821_v6 }
 0x186   : > { %v893_v62 = vpop.f32.mrf.mxu2 }
 0x187   : > { %v823_v14 = vadd.f32 1e-05, %v822_v28 }
 0x189   : > { %1889 = vrsqrt.f32 %v823_v14  ;;  %vm830_vm12 = vweird.f32 %v823_v14 }
 0x18c   : > { %v1138_v36 = vpop.xlane.xlu1 %1137 }
 0x18d   : > { %v940_v30 = vpop.f32.mrf.mxu3 }
 0x18e   : > { %v941_v7 = vadd.f32 %v940_v30, %v893_v62  ;;  %v895_v55 = vpop.f32.mrf.mxu2 }
 0x18f   : > { %v1890_v38 = vpop.eup %1889 }
 0x190   : > { %v825_v18 = vmul.f32 %v1890_v38, %v823_v14  ;;  %vm831_vm13 = vweird.f32 %v1890_v38 }
 0x191   : > { %vm832_vm14 = vmor %vm830_vm12, %vm831_vm13 }
 0x192   : > { %v826_v5 = vmul.f32 %v1890_v38, %v825_v18 }
 0x194   : > { %v827_v27 = vmul.f32 0.5, %v826_v5 }
 0x195   : > { %v942_v41 = vpop.f32.mrf.mxu3 }
 0x196   : > { %v828_v32 = vsub.f32 1.5, %v827_v27 }
 0x198   : > { %v829_v19 = vmul.f32 %v1890_v38, %v828_v32 }
 0x199   : > { %v1104_v39 = vpop.xlane.xlu0 %1103 }
 0x19a   : > { %v1139_v25 = vadd.f32 %v1138_v36, %v1104_v39  ;;  %v833_v0 = vsel %vm832_vm14, %v1890_v38, %v829_v19 }
 0x19b   : > { %v944_v13 = vmul.f32 %v941_v7, %v833_v0 }
 0x19c   : > { %v1140_v47 = vmul.f32 0.0078125, %v1139_v25 }
 0x19d   : > { %v945_v51 = vadd.f32 %v3173_v20, %v944_v13 }
 0x19e   : > { %v1141_v63 = vadd.f32 1e-05, %v1140_v47 }
 0x19f   : > { %v947_v50 = vrot.slane %v945_v51, 1  ;;  %v948_v16 = vrot.slane %v945_v51, 2  ;;  %v949_v4 = vrot.slane %v945_v51, 3  ;;  %961 = vst.msk [vmem:[%s3176_s7 + $0x1] sm:$0x1] %vm642_vm11, %v945_v51  ;;  %v950_v49 = vrot.slane %v945_v51, 4 }
 0x1a0   : > { %1891 = vrsqrt.f32 %v1141_v63  ;;  %v951_v56 = vrot.slane %v945_v51, 5  ;;  %v952_v52 = vrot.slane %v945_v51, 6  ;;  %v953_v35 = vrot.slane %v945_v51, 7 }
 0x1a1   : > { %962 = vst.msk [vmem:[%s3176_s7 + $0x5] sm:$0x1] %vm642_vm11, %v947_v50  ;;  %vm1148_vm0 = vweird.f32 %v1141_v63 }
 0x1a2   : > { %963 = vst.msk [vmem:[%s3176_s7 + $0x9] sm:$0x1] %vm642_vm11, %v948_v16 }
 0x1a3   : > { %964 = vst.msk [vmem:[%s3176_s7 + $0xd] sm:$0x1] %vm642_vm11, %v949_v4 }
 0x1a4   : > { %965 = vst.msk [vmem:[%s3176_s7 + $0x11] sm:$0x1] %vm642_vm11, %v950_v49 }
 0x1a5   : > { %966 = vst.msk [vmem:[%s3176_s7 + $0x15] sm:$0x1] %vm642_vm11, %v951_v56 }
 0x1a6   : > { %v1892_v10 = vpop.eup %1891  ;;  %967 = vst.msk [vmem:[%s3176_s7 + $0x19] sm:$0x1] %vm642_vm11, %v952_v52 }
 0x1a7   : > { %v1143_v60 = vmul.f32 %v1892_v10, %v1141_v63  ;;  %v1422_v8 = vpop.xlane.xlu2 %1421  ;;  %968 = vst.msk [vmem:[%s3176_s7 + $0x1d] sm:$0x1] %vm642_vm11, %v953_v35  ;;  %vm1149_vm15 = vweird.f32 %v1892_v10 }
 0x1a8   : > { %vm1150_vm1 = vmor %vm1148_vm0, %vm1149_vm15 }
 0x1a9   : > { %v1144_v40 = vmul.f32 %v1892_v10, %v1143_v60 }
 0x1ab   : > { %v1145_v1 = vmul.f32 0.5, %v1144_v40 }
 0x1ad   : > { %v1146_v15 = vsub.f32 1.5, %v1145_v1 }
 0x1af   : > { %v1147_v45 = vmul.f32 %v1892_v10, %v1146_v15 }
 0x1b1   : > { %v1151_v22 = vsel %vm1150_vm1, %v1892_v10, %v1147_v45 }
 0x1b3   : > { %v1456_v23 = vpop.xlane.xlu0 %1455 }
 0x1b4   : > { %v1457_v61 = vadd.f32 %v1456_v23, %v1422_v8 }
 0x1b6   : > { %v1458_v24 = vmul.f32 0.0078125, %v1457_v61 }
 0x1b8   : > { %v1459_v44 = vadd.f32 1e-05, %v1458_v24 }
 0x1ba   : > { %1893 = vrsqrt.f32 %v1459_v44  ;;  %vm1466_vm3 = vweird.f32 %v1459_v44 }
 0x1c0   : > { %v1894_v59 = vpop.eup %1893 }
 0x1c1   : > { %v1461_v2 = vmul.f32 %v1894_v59, %v1459_v44  ;;  %vm1467_vm2 = vweird.f32 %v1894_v59 }
 0x1c2   : > { %vm3212_vm4 = vmor %vm1466_vm3, %vm1467_vm2 }
 0x1c3   : > { %v1462_v43 = vmul.f32 %v1894_v59, %v1461_v2 }
 0x1c5   : > { %v1463_v9 = vmul.f32 0.5, %v1462_v43 }
 0x1c7   : > { %v1464_v28 = vsub.f32 1.5, %v1463_v9 }
 0x1c9   : > { %v1211_v29 = vpop.f32.mrf.mxu0  ;;  %v1258_v6 = vpop.f32.mrf.mxu1  ;;  %v1465_v46 = vmul.f32 %v1894_v59, %v1464_v28 }
 0x1ca   : > { %v1259_v54 = vadd.f32 %v1258_v6, %v1211_v29 }
 0x1cb   : > { %v1469_v26 = vsel %vm3212_vm4, %v1894_v59, %v1465_v46 }
 0x1cc   : > { %v1262_v14 = vmul.f32 %v1259_v54, %v1151_v22 }
 0x1ce   : > { %v1263_v3 = vadd.f32 %v3173_v20, %v1262_v14  ;;  %v1529_v34 = vpop.f32.mrf.mxu2 }
 0x1d0   : > { %v1265_v21 = vrot.slane %v1263_v3, 1  ;;  %v1266_v58 = vrot.slane %v1263_v3, 2  ;;  %v1267_v37 = vrot.slane %v1263_v3, 3  ;;  %1279 = vst.msk [vmem:[%s3176_s7 + $0x2] sm:$0x1] %vm642_vm11, %v1263_v3  ;;  %v1268_v12 = vrot.slane %v1263_v3, 4 }
 0x1d1   : > { %v1576_v31 = vpop.f32.mrf.mxu3  ;;  %v1213_v17 = vpop.f32.mrf.mxu0  ;;  %v1269_v42 = vrot.slane %v1263_v3, 5  ;;  %v1270_v38 = vrot.slane %v1263_v3, 6  ;;  %v1271_v11 = vrot.slane %v1263_v3, 7 }
 0x1d2   : > { %v1577_v53 = vadd.f32 %v1576_v31, %v1529_v34  ;;  %v1260_v57 = vpop.f32.mrf.mxu1  ;;  %1280 = vst.msk [vmem:[%s3176_s7 + $0x6] sm:$0x1] %vm642_vm11, %v1265_v21 }
 0x1d3   : > { %1281 = vst.msk [vmem:[%s3176_s7 + $0xa] sm:$0x1] %vm642_vm11, %v1266_v58 }
 0x1d4   : > { %v1580_v33 = vmul.f32 %v1577_v53, %v1469_v26  ;;  %1282 = vst.msk [vmem:[%s3176_s7 + $0xe] sm:$0x1] %vm642_vm11, %v1267_v37 }
 0x1d5   : > { %1283 = vst.msk [vmem:[%s3176_s7 + $0x12] sm:$0x1] %vm642_vm11, %v1268_v12 }
 0x1d6   : > { %v1581_v18 = vadd.f32 %v3173_v20, %v1580_v33  ;;  %1284 = vst.msk [vmem:[%s3176_s7 + $0x16] sm:$0x1] %vm642_vm11, %v1269_v42  ;;  %v1531_v25 = vpop.f32.mrf.mxu2 }
 0x1d7   : > { %1285 = vst.msk [vmem:[%s3176_s7 + $0x1a] sm:$0x1] %vm642_vm11, %v1270_v38 }
 0x1d8   : > { %v1583_v39 = vrot.slane %v1581_v18, 1  ;;  %v1584_v36 = vrot.slane %v1581_v18, 2  ;;  %1286 = vst.msk [vmem:[%s3176_s7 + $0x1e] sm:$0x1] %vm642_vm11, %v1271_v11  ;;  %v1585_v5 = vrot.slane %v1581_v18, 3  ;;  %v1586_v27 = vrot.slane %v1581_v18, 4 }
 0x1d9   : > { %v1578_v20 = vpop.f32.mrf.mxu3  ;;  %1597 = vst.msk [vmem:[%s3176_s7 + $0x3] sm:$0x1] %vm642_vm11, %v1581_v18  ;;  %v1587_v47 = vrot.slane %v1581_v18, 5  ;;  %v1588_v32 = vrot.slane %v1581_v18, 6  ;;  %v1589_v63 = vrot.slane %v1581_v18, 7 }
 0x1da   : > { %1598 = vst.msk [vmem:[%s3176_s7 + $0x7] sm:$0x1] %vm642_vm11, %v1583_v39 }
 0x1db   : > { %1599 = vst.msk [vmem:[%s3176_s7 + $0xb] sm:$0x1] %vm642_vm11, %v1584_v36 }
 0x1dc   : > { %1600 = vst.msk [vmem:[%s3176_s7 + $0xf] sm:$0x1] %vm642_vm11, %v1585_v5 }
 0x1dd   : > { %1601 = vst.msk [vmem:[%s3176_s7 + $0x13] sm:$0x1] %vm642_vm11, %v1586_v27 }
 0x1de   : > { %1602 = vst.msk [vmem:[%s3176_s7 + $0x17] sm:$0x1] %vm642_vm11, %v1587_v47 }
 0x1df   : > { %1603 = vst.msk [vmem:[%s3176_s7 + $0x1b] sm:$0x1] %vm642_vm11, %v1588_v32 }
 0x1e0   : > { %1604 = vst.msk [vmem:[%s3176_s7 + $0x1f] sm:$0x1] %vm642_vm11, %v1589_v63 }
 0x1e1   : > { %2028 = shalt.err (!%p2025_p10)
}
 0x1e2   : > { %s2077_s20 = smov 64   ;;  %s2078_s26 = smov 4  }
 0x1e3   : > { %1825 = dma.vmem_to_hbm [thread:$0]  (%p2176_p3), %s1619_s19, 512, %s1621_s24, %s1606_s23, %s2077_s20, %s2077_s20, %s2078_s26  }
 0x1e4 PF: > { %s1635_s6 = sand.u32 1, %s2059_s15   ;;  %p3376_p12 = scmp.ge.s32.totalorder %s2071_s18, 2 }
 0x1e5   : > { %s1636_s7 = scalar_lea.sflag [#allocation4], %s1635_s6 }
 0x1e6   : > { %p1839_p13 = pnand %p3376_p12, %p2139_p6 }
 0x1e8   : > { %p1840_p0 = pneg %p1839_p13 }
 0x1ea   : > { %2054 = dma.done.wait (%p1840_p0), %s1636_s7, 512  }
 0x1eb   : > { %2056 = vsyncadd (%p1840_p0), %s1636_s7, 4294966784  ;;  %p18_p5 = scmp.ge.s32.totalorder %s2166_s10, 4   ;;  %s3377_s15 = smov %s2063_s16 }
 0x1ec   : > { %s3378_s16 = smov %s2067_s17  ;;  %s3379_s17 = smov %s2182_s14 }
 0x1ed   : > { %s3380_s18 = smov %s2166_s10  ;;  %20 = sbr.rel (!%p18_p5) target bundleno = 6 (0x6), region = 90 }
 0x1f2   :  { %1642 = vsyncpa [#allocation3], 1 }
 0x1f3   :  { %1644 = vsyncpa [#allocation3 + $0x1], 1 }
 0x1f4   :  { %1645 = vsyncpa [#allocation6], 1 }
 0x1f5   :  { %1646 = vsyncpa [#allocation4], 1 }
 0x1f6   :  { %1648 = vsyncpa [#allocation4 + $0x1], 1 }

</bundles_post_ra>
